<compile_context>
chip_gen: v6e
topology: v6e:2x2x1
jax: 0.10.0
libtpu: 0.0.40
codegen_flags: <defaults>
</compile_context>

<pallas_src>
import functools

import jax
import jax.numpy as jnp
from jax.experimental import pallas as pl
from jax.experimental.pallas import tpu as pltpu

# ------------------------- scaled-down config -------------------------------
VOCAB = 64
TYPE_VOCAB = 2
MAX_POS = 32
HIDDEN = 32          # stands in for 768
N_LAYERS = 2
N_HEADS = 2
HEAD_DIM = HIDDEN // N_HEADS
INTERMEDIATE = 64    # stands in for 3072
GRU_HIDDEN = HIDDEN // 2   # 16; bidirectional -> 32 (mirrors 768 -> 2*384)
N_CLASSES = 3
LN_EPS = 1e-12


# --------------------- kernel 1: fused BERT encoder -------------------------
def _bert_encoder_kernel(
    x_ref, bias_ref,
    emb_g_ref, emb_b_ref,
    wqkv_ref, bqkv_ref, wo_ref, bo_ref,
    ln1_g_ref, ln1_b_ref,
    wff1_ref, bff1_ref, wff2_ref, bff2_ref,
    ln2_g_ref, ln2_b_ref,
    pool_w_ref, pool_b_ref,
    hidden_ref, pooled_ref,
    *, n_layers, n_heads, head_dim, eps):
    x = x_ref[0]                         # (S, H)   one batch element
    bias = bias_ref[0, 0]                # (S,)     additive attention bias
    hdim = n_heads * head_dim
    scale = 1.0 / (head_dim ** 0.5)

    def layernorm(v, g, b):
        mu = jnp.mean(v, axis=-1, keepdims=True)
        var = jnp.mean((v - mu) ** 2, axis=-1, keepdims=True)
        return (v - mu) * jax.lax.rsqrt(var + eps) * g + b

    def gelu(v):
        # TODO(synk): HF BERT uses exact erf-gelu; tanh approximation used here.
        return 0.5 * v * (1.0 + jnp.tanh(
            0.7978845608028654 * (v + 0.044715 * v * v * v)))

    # embeddings LayerNorm
    x = layernorm(x, emb_g_ref[...], emb_b_ref[...])

    for l in range(n_layers):            # static unroll, N_LAYERS is tiny
        # fused QKV projection: one (S,H)x(H,3H) MXU push
        qkv = (jnp.dot(x, wqkv_ref[l], preferred_element_type=jnp.float32)
               + bqkv_ref[l])            # (S, 3H)

        # per-head attention, heads sliced straight out of the lane dim
        ctx_heads = []
        for h in range(n_heads):
            q = qkv[:, h * head_dim:(h + 1) * head_dim]
            k = qkv[:, hdim + h * head_dim: hdim + (h + 1) * head_dim]
            v = qkv[:, 2 * hdim + h * head_dim: 2 * hdim + (h + 1) * head_dim]
            s = (jnp.dot(q, k.T, preferred_element_type=jnp.float32) * scale
                 + bias[None, :])
            s = s - jnp.max(s, axis=-1, keepdims=True)
            p = jnp.exp(s)
            p = p * pl.reciprocal(jnp.sum(p, axis=-1, keepdims=True), approx=True)
            ctx_heads.append(jnp.dot(p, v, preferred_element_type=jnp.float32))
        ctx = jnp.concatenate(ctx_heads, axis=-1)          # (S, H)

        attn_out = (jnp.dot(ctx, wo_ref[l], preferred_element_type=jnp.float32)
                    + bo_ref[l])
        x1 = layernorm(x + attn_out, ln1_g_ref[l], ln1_b_ref[l])

        ff = gelu(jnp.dot(x1, wff1_ref[l], preferred_element_type=jnp.float32)
                  + bff1_ref[l])
        ff = (jnp.dot(ff, wff2_ref[l], preferred_element_type=jnp.float32)
              + bff2_ref[l])
        x = layernorm(x1 + ff, ln2_g_ref[l], ln2_b_ref[l])

    hidden_ref[0] = x                                       # (S, H)
    # pooler: tanh(W * last_hidden[:, 0] + b)
    cls = x[0:1, :]                                         # (1, H)
    pooled_ref[0] = jnp.tanh(
        jnp.dot(cls, pool_w_ref[...], preferred_element_type=jnp.float32)
        + pool_b_ref[...])


def bert_encoder(x_emb, bias, p):
    B, S, H = x_emb.shape
    weights = [
        p["emb_ln_g"], p["emb_ln_b"],
        p["wqkv"], p["bqkv"], p["wo"], p["bo"],
        p["ln1_g"], p["ln1_b"],
        p["w_ff1"], p["b_ff1"], p["w_ff2"], p["b_ff2"],
        p["ln2_g"], p["ln2_b"],
        p["pool_w"], p["pool_b"],
    ]

    def full_spec(a):
        nd = a.ndim
        return pl.BlockSpec(a.shape, lambda *_: (0,) * nd)

    in_specs = ([pl.BlockSpec((1, S, H), lambda b: (b, 0, 0)),   # x_emb
                 pl.BlockSpec((1, 1, S), lambda b: (b, 0, 0))]   # attn bias
                + [full_spec(w) for w in weights])
    out_specs = [pl.BlockSpec((1, S, H), lambda b: (b, 0, 0)),
                 pl.BlockSpec((1, 1, H), lambda b: (b, 0, 0))]

    kernel = functools.partial(_bert_encoder_kernel, n_layers=N_LAYERS,
                               n_heads=N_HEADS, head_dim=HEAD_DIM, eps=LN_EPS)
    hidden, pooled = pl.pallas_call(
        kernel,
        out_shape=(jax.ShapeDtypeStruct((B, S, H), jnp.float32),
                   jax.ShapeDtypeStruct((B, 1, H), jnp.float32)),
        grid_spec=pltpu.PrefetchScalarGridSpec(
            num_scalar_prefetch=0, grid=(B,),
            in_specs=in_specs, out_specs=out_specs),
        compiler_params=pltpu.CompilerParams(
            dimension_semantics=("parallel",)),   # batch sharded over TCs (v7x)
    )(x_emb, bias, *weights)
    return hidden, pooled


# -------------- kernel 2: fused bidirectional GRU + dense head ---------------
def _bigru_head_kernel(x_ref, wih_f_ref, whh_f_ref, bih_f_ref, bhh_f_ref,
                       wih_b_ref, whh_b_ref, bih_b_ref, bhh_b_ref,
                       dw_ref, db_ref, o_ref, *, hidden):
    T, B, I = x_ref.shape
    G = hidden
    x = x_ref[...]                       # (T, B, I)
    xf = x.reshape(T * B, I)

    def gru_step(gi, h, whh, bhh):
        # PyTorch GRU gate order [r, z, n]
        gh = jnp.dot(h, whh, preferred_element_type=jnp.float32) + bhh
        r = jax.nn.sigmoid(gi[:, 0:G] + gh[:, 0:G])
        z = jax.nn.sigmoid(gi[:, G:2 * G] + gh[:, G:2 * G])
        n = jnp.tanh(gi[:, 2 * G:3 * G] + r * gh[:, 2 * G:3 * G])
        return (1.0 - z) * n + z * h

    # forward direction: input projection hoisted out of the recurrence
    gi_f = (jnp.dot(xf, wih_f_ref[...], preferred_element_type=jnp.float32)
            + bih_f_ref[...]).reshape(T, B, 3 * G)
    h_f = jnp.zeros((B, G), jnp.float32)
    for t in range(T):                   # static unroll; only h @ W_hh per step
        h_f = gru_step(gi_f[t], h_f, whh_f_ref[...], bhh_f_ref[...])

    # backward direction: out[:, -1, G:] is the backward RNN's FIRST step,
    # i.e. one GRU step on x[T-1] starting from h0 = 0 — no full reverse pass.
    # TODO(synk): matches nn.GRU on zero-padded rows (pad_sequence, no packing),
    # same as the reference module.
    gi_b = (jnp.dot(x[T - 1], wih_b_ref[...], preferred_element_type=jnp.float32)
            + bih_b_ref[...])
    h_b = gru_step(gi_b, jnp.zeros((B, G), jnp.float32),
                   whh_b_ref[...], bhh_b_ref[...])

    # dense head on out[:, -1, :] = concat(h_f, h_b)
    last = jnp.concatenate([h_f, h_b], axis=-1)             # (B, 2G)
    o_ref[...] = (jnp.dot(last, dw_ref[...], preferred_element_type=jnp.float32)
                  + db_ref[...])


def pallas_bigru_head(x_tbi, gf, gb, dense_w, dense_b):
    T, B, I = x_tbi.shape
    G = gf["w_hh"].shape[0]
    vmem = pl.BlockSpec(memory_space=pltpu.MemorySpace.VMEM)
    return pl.pallas_call(
        functools.partial(_bigru_head_kernel, hidden=G),
        out_shape=jax.ShapeDtypeStruct((B, N_CLASSES), jnp.float32),
        in_specs=[vmem] * 11,
        out_specs=vmem,
    )(x_tbi,
      gf["w_ih"], gf["w_hh"], gf["b_ih"], gf["b_hh"],
      gb["w_ih"], gb["w_hh"], gb["b_ih"], gb["b_hh"],
      dense_w, dense_b)


# --------------------------- parameter init ----------------------------------
def _init_params(key):
    keys = iter(jax.random.split(key, 64))

    def nrm(shape, scale=0.02):
        return (scale * jax.random.normal(next(keys), shape)).astype(jnp.float32)

    def zeros(shape):
        return jnp.zeros(shape, jnp.float32)

    def ones(shape):
        return jnp.ones(shape, jnp.float32)

    L = N_LAYERS
    params = {
        "word_emb": nrm((VOCAB, HIDDEN)),
        "pos_emb": nrm((MAX_POS, HIDDEN)),
        "type_emb": nrm((TYPE_VOCAB, HIDDEN)),
        "emb_ln_g": ones((1, HIDDEN)), "emb_ln_b": zeros((1, HIDDEN)),
        # per-layer weights stacked on a leading layer axis; q|k|v concatenated
        "wqkv": nrm((L, HIDDEN, 3 * HIDDEN)), "bqkv": zeros((L, 1, 3 * HIDDEN)),
        "wo": nrm((L, HIDDEN, HIDDEN)), "bo": zeros((L, 1, HIDDEN)),
        "ln1_g": ones((L, 1, HIDDEN)), "ln1_b": zeros((L, 1, HIDDEN)),
        "w_ff1": nrm((L, HIDDEN, INTERMEDIATE)), "b_ff1": zeros((L, 1, INTERMEDIATE)),
        "w_ff2": nrm((L, INTERMEDIATE, HIDDEN)), "b_ff2": zeros((L, 1, HIDDEN)),
        "ln2_g": ones((L, 1, HIDDEN)), "ln2_b": zeros((L, 1, HIDDEN)),
        "pool_w": nrm((HIDDEN, HIDDEN)), "pool_b": zeros((1, HIDDEN)),
        "dense_w": nrm((2 * GRU_HIDDEN, N_CLASSES)), "dense_b": zeros((1, N_CLASSES)),
    }
    for d in ("gru_fwd", "gru_bwd"):
        params[d] = {
            "w_ih": nrm((HIDDEN, 3 * GRU_HIDDEN), 0.1),
            "w_hh": nrm((GRU_HIDDEN, 3 * GRU_HIDDEN), 0.1),
            "b_ih": zeros((1, 3 * GRU_HIDDEN)),
            "b_hh": zeros((1, 3 * GRU_HIDDEN)),
        }
    return params


# ------------------------------ forward --------------------------------------
def bert_lstm_forward(params, input_ids, type_ids, attmask, start_list, end_list):
    B, S = input_ids.shape
    # --- BERT embeddings (gathers are plain-JAX glue) ---
    x = (params["word_emb"][input_ids]
         + params["pos_emb"][jnp.arange(S)][None, :, :]
         + params["type_emb"][type_ids])                       # (B, S, H)
    bias = ((1.0 - attmask.astype(jnp.float32)) * -10000.0).reshape(B, 1, S)

    # --- fused BERT encoder + pooler (one pallas_call) ---
    last_hidden, pooled = bert_encoder(x, bias, params)
    cls_msg = pooled                                            # (B, 1, H)

    # --- per-example span slice + pad_sequence(padding_value=0) (glue) ---
    starts = jnp.asarray(start_list, jnp.int32)
    ends = jnp.asarray(end_list, jnp.int32)
    lengths = [int(e) - int(s) for s, e in zip(start_list, end_list)]
    l_max = max(lengths)
    pos = starts[:, None] + 1 + jnp.arange(l_max)[None, :]      # seq[i, start+1:end+1]
    valid = jnp.arange(l_max)[None, :] < (ends - starts)[:, None]
    pos = jnp.clip(pos, 0, S - 1)
    tok = jnp.take_along_axis(last_hidden, pos[:, :, None], axis=1)
    token_msg = jnp.where(valid[:, :, None], tok, 0.0)          # (B, Lmax, H)

    input_cat = jnp.concatenate([cls_msg, token_msg], axis=1)   # (B, 1+Lmax, H)

    # --- fused bidirectional GRU + dense head (one pallas_call) ---
    x_tbi = jnp.transpose(input_cat, (1, 0, 2))                 # (T, B, H)
    logits = pallas_bigru_head(x_tbi, params["gru_fwd"], params["gru_bwd"],
                               params["dense_w"], params["dense_b"])
    return logits                                               # (B, 3)


# -------------------------------- main ----------------------------------------
if __name__ == "__main__":
    key = jax.random.PRNGKey(0)
    k_par, k_ids = jax.random.split(key)

    params = _init_params(k_par)

    B, S = 2, 8
    input_ids = jax.random.randint(k_ids, (B, S), 1, VOCAB, dtype=jnp.int32)
    type_ids = jnp.zeros((B, S), jnp.int32)
    attmask = jnp.ones((B, S), jnp.int32)
    start_list = [1, 2]
    end_list = [4, 6]

    logits = bert_lstm_forward(params, input_ids, type_ids, attmask,
                               start_list, end_list)
    logits = jax.block_until_ready(logits)
    assert logits.shape == (B, N_CLASSES)
    print("KERNEL_OK")
</pallas_src>

<mosaic_0001>
module attributes {stable_mosaic.version = 11 : i64} {
  func.func @_bert_encoder_kernel(%arg0: i32, %arg1: memref<1x8x32xf32, #tpu.memory_space<vmem>>, %arg2: memref<1x1x8xf32, #tpu.memory_space<vmem>>, %arg3: memref<1x32xf32, #tpu.memory_space<vmem>>, %arg4: memref<1x32xf32, #tpu.memory_space<vmem>>, %arg5: memref<2x32x96xf32, #tpu.memory_space<vmem>>, %arg6: memref<2x1x96xf32, #tpu.memory_space<vmem>>, %arg7: memref<2x32x32xf32, #tpu.memory_space<vmem>>, %arg8: memref<2x1x32xf32, #tpu.memory_space<vmem>>, %arg9: memref<2x1x32xf32, #tpu.memory_space<vmem>>, %arg10: memref<2x1x32xf32, #tpu.memory_space<vmem>>, %arg11: memref<2x32x64xf32, #tpu.memory_space<vmem>>, %arg12: memref<2x1x64xf32, #tpu.memory_space<vmem>>, %arg13: memref<2x64x32xf32, #tpu.memory_space<vmem>>, %arg14: memref<2x1x32xf32, #tpu.memory_space<vmem>>, %arg15: memref<2x1x32xf32, #tpu.memory_space<vmem>>, %arg16: memref<2x1x32xf32, #tpu.memory_space<vmem>>, %arg17: memref<32x32xf32, #tpu.memory_space<vmem>>, %arg18: memref<1x32xf32, #tpu.memory_space<vmem>>, %arg19: memref<1x8x32xf32, #tpu.memory_space<vmem>>, %arg20: memref<1x1x32xf32, #tpu.memory_space<vmem>>) attributes {dimension_semantics = [#tpu.dimension_semantics<parallel>], iteration_bounds = array<i64: 2>, scalar_prefetch = 0 : i64, scratch_operands = 0 : i64, tpu.core_type = #tpu.core_type<tc>, window_params = [{transform_indices = @transform_0, window_bounds = array<i64: 1, 8, 32>}, {transform_indices = @transform_1, window_bounds = array<i64: 1, 1, 8>}, {pipeline_mode = #tpu.pipeline_mode<synchronous>, transform_indices = @transform_2, window_bounds = array<i64: 1, 32>}, {pipeline_mode = #tpu.pipeline_mode<synchronous>, transform_indices = @transform_3, window_bounds = array<i64: 1, 32>}, {pipeline_mode = #tpu.pipeline_mode<synchronous>, transform_indices = @transform_4, window_bounds = array<i64: 2, 32, 96>}, {pipeline_mode = #tpu.pipeline_mode<synchronous>, transform_indices = @transform_5, window_bounds = array<i64: 2, 1, 96>}, {pipeline_mode = #tpu.pipeline_mode<synchronous>, transform_indices = @transform_6, window_bounds = array<i64: 2, 32, 32>}, {pipeline_mode = #tpu.pipeline_mode<synchronous>, transform_indices = @transform_7, window_bounds = array<i64: 2, 1, 32>}, {pipeline_mode = #tpu.pipeline_mode<synchronous>, transform_indices = @transform_8, window_bounds = array<i64: 2, 1, 32>}, {pipeline_mode = #tpu.pipeline_mode<synchronous>, transform_indices = @transform_9, window_bounds = array<i64: 2, 1, 32>}, {pipeline_mode = #tpu.pipeline_mode<synchronous>, transform_indices = @transform_10, window_bounds = array<i64: 2, 32, 64>}, {pipeline_mode = #tpu.pipeline_mode<synchronous>, transform_indices = @transform_11, window_bounds = array<i64: 2, 1, 64>}, {pipeline_mode = #tpu.pipeline_mode<synchronous>, transform_indices = @transform_12, window_bounds = array<i64: 2, 64, 32>}, {pipeline_mode = #tpu.pipeline_mode<synchronous>, transform_indices = @transform_13, window_bounds = array<i64: 2, 1, 32>}, {pipeline_mode = #tpu.pipeline_mode<synchronous>, transform_indices = @transform_14, window_bounds = array<i64: 2, 1, 32>}, {pipeline_mode = #tpu.pipeline_mode<synchronous>, transform_indices = @transform_15, window_bounds = array<i64: 2, 1, 32>}, {pipeline_mode = #tpu.pipeline_mode<synchronous>, transform_indices = @transform_16, window_bounds = array<i64: 32, 32>}, {pipeline_mode = #tpu.pipeline_mode<synchronous>, transform_indices = @transform_17, window_bounds = array<i64: 1, 32>}, {transform_indices = @transform_18, window_bounds = array<i64: 1, 8, 32>}, {transform_indices = @transform_19, window_bounds = array<i64: 1, 1, 32>}]} {
    %c0 = arith.constant 0 : index
    %c0_0 = arith.constant 0 : index
    %c0_1 = arith.constant 0 : index
    %0 = vector.load %arg1[%c0, %c0_0, %c0_1] : memref<1x8x32xf32, #tpu.memory_space<vmem>>, vector<1x8x32xf32>
    %1 = vector.shape_cast %0 : vector<1x8x32xf32> to vector<8x32xf32>
    %c0_2 = arith.constant 0 : index
    %c0_3 = arith.constant 0 : index
    %c0_4 = arith.constant 0 : index
    %2 = vector.load %arg2[%c0_2, %c0_3, %c0_4] : memref<1x1x8xf32, #tpu.memory_space<vmem>>, vector<1x1x8xf32>
    %3 = vector.shape_cast %2 : vector<1x1x8xf32> to vector<8xf32>
    %c0_5 = arith.constant 0 : index
    %c0_6 = arith.constant 0 : index
    %4 = vector.load %arg3[%c0_5, %c0_6] : memref<1x32xf32, #tpu.memory_space<vmem>>, vector<1x32xf32>
    %c0_7 = arith.constant 0 : index
    %c0_8 = arith.constant 0 : index
    %5 = vector.load %arg4[%c0_7, %c0_8] : memref<1x32xf32, #tpu.memory_space<vmem>>, vector<1x32xf32>
    %cst = arith.constant dense<0.000000e+00> : vector<8xf32>
    %6 = vector.multi_reduction <add>, %1, %cst [1] : vector<8x32xf32> to vector<8xf32>
    %7 = vector.shape_cast %6 : vector<8xf32> to vector<8x1xf32>
    %cst_9 = arith.constant 3.200000e+01 : f32
    %8 = vector.broadcast %cst_9 : f32 to vector<8x1xf32>
    %9 = arith.divf %7, %8 : vector<8x1xf32>
    %10 = vector.broadcast %9 : vector<8x1xf32> to vector<8x32xf32>
    %11 = arith.subf %1, %10 : vector<8x32xf32>
    %12 = arith.mulf %11, %11 : vector<8x32xf32>
    %cst_10 = arith.constant dense<0.000000e+00> : vector<8xf32>
    %13 = vector.multi_reduction <add>, %12, %cst_10 [1] : vector<8x32xf32> to vector<8xf32>
    %14 = vector.shape_cast %13 : vector<8xf32> to vector<8x1xf32>
    %cst_11 = arith.constant 3.200000e+01 : f32
    %15 = vector.broadcast %cst_11 : f32 to vector<8x1xf32>
    %16 = arith.divf %14, %15 : vector<8x1xf32>
    %17 = vector.broadcast %9 : vector<8x1xf32> to vector<8x32xf32>
    %18 = arith.subf %1, %17 : vector<8x32xf32>
    %cst_12 = arith.constant 9.99999996E-13 : f32
    %19 = vector.broadcast %cst_12 : f32 to vector<8x1xf32>
    %20 = arith.addf %16, %19 : vector<8x1xf32>
    %21 = math.rsqrt %20 : vector<8x1xf32>
    %22 = vector.broadcast %21 : vector<8x1xf32> to vector<8x32xf32>
    %23 = arith.mulf %18, %22 : vector<8x32xf32>
    %24 = vector.broadcast %4 : vector<1x32xf32> to vector<8x32xf32>
    %25 = arith.mulf %23, %24 : vector<8x32xf32>
    %26 = vector.broadcast %5 : vector<1x32xf32> to vector<8x32xf32>
    %27 = arith.addf %25, %26 : vector<8x32xf32>
    %c0_13 = arith.constant 0 : index
    %c0_14 = arith.constant 0 : index
    %c0_15 = arith.constant 0 : index
    %28 = vector.load %arg5[%c0_13, %c0_14, %c0_15] : memref<2x32x96xf32, #tpu.memory_space<vmem>>, vector<1x32x96xf32>
    %29 = vector.shape_cast %28 : vector<1x32x96xf32> to vector<32x96xf32>
    %cst_16 = arith.constant dense<0.000000e+00> : vector<8x96xf32>
    %30 = tpu.matmul %27, %29, %cst_16 {dimension_numbers = #tpu.dot_dimension_numbers<[1], [0], [0], [1], [0, 0, 1, 1], [], []>} : vector<8x32xf32>, vector<32x96xf32>, vector<8x96xf32> -> vector<8x96xf32>
    %c0_17 = arith.constant 0 : index
    %c0_18 = arith.constant 0 : index
    %c0_19 = arith.constant 0 : index
    %31 = vector.load %arg6[%c0_17, %c0_18, %c0_19] : memref<2x1x96xf32, #tpu.memory_space<vmem>>, vector<1x1x96xf32>
    %32 = vector.shape_cast %31 : vector<1x1x96xf32> to vector<1x96xf32>
    %33 = vector.broadcast %32 : vector<1x96xf32> to vector<8x96xf32>
    %34 = arith.addf %30, %33 : vector<8x96xf32>
    %35 = vector.extract_strided_slice %34 {offsets = [0, 0], sizes = [8, 16], strides = [1, 1]} : vector<8x96xf32> to vector<8x16xf32>
    %36 = vector.extract_strided_slice %34 {offsets = [0, 32], sizes = [8, 16], strides = [1, 1]} : vector<8x96xf32> to vector<8x16xf32>
    %37 = vector.extract_strided_slice %34 {offsets = [0, 64], sizes = [8, 16], strides = [1, 1]} : vector<8x96xf32> to vector<8x16xf32>
    %38 = tpu.transpose %36, [1, 0] : vector<8x16xf32> -> vector<16x8xf32>
    %cst_20 = arith.constant dense<0.000000e+00> : vector<8x8xf32>
    %39 = tpu.matmul %35, %38, %cst_20 {dimension_numbers = #tpu.dot_dimension_numbers<[1], [0], [0], [1], [0, 0, 1, 1], [], []>} : vector<8x16xf32>, vector<16x8xf32>, vector<8x8xf32> -> vector<8x8xf32>
    %cst_21 = arith.constant 2.500000e-01 : f32
    %40 = vector.broadcast %cst_21 : f32 to vector<8x8xf32>
    %41 = arith.mulf %39, %40 : vector<8x8xf32>
    %42 = vector.shape_cast %3 : vector<8xf32> to vector<1x8xf32>
    %43 = vector.broadcast %42 : vector<1x8xf32> to vector<8x8xf32>
    %44 = arith.addf %41, %43 : vector<8x8xf32>
    %cst_22 = arith.constant dense<0xFF800000> : vector<8xf32>
    %45 = vector.multi_reduction <maximumf>, %44, %cst_22 [1] : vector<8x8xf32> to vector<8xf32>
    %46 = vector.shape_cast %45 : vector<8xf32> to vector<8x1xf32>
    %47 = vector.broadcast %46 : vector<8x1xf32> to vector<8x8xf32>
    %48 = arith.subf %44, %47 : vector<8x8xf32>
    %49 = math.exp %48 : vector<8x8xf32>
    %cst_23 = arith.constant dense<0.000000e+00> : vector<8xf32>
    %50 = vector.multi_reduction <add>, %49, %cst_23 [1] : vector<8x8xf32> to vector<8xf32>
    %51 = vector.shape_cast %50 : vector<8xf32> to vector<8x1xf32>
    %52 = tpu.reciprocal %51 {approx = true} : vector<8x1xf32> -> vector<8x1xf32>
    %53 = vector.broadcast %52 : vector<8x1xf32> to vector<8x8xf32>
    %54 = arith.mulf %49, %53 : vector<8x8xf32>
    %cst_24 = arith.constant dense<0.000000e+00> : vector<8x16xf32>
    %55 = tpu.matmul %54, %37, %cst_24 {dimension_numbers = #tpu.dot_dimension_numbers<[1], [0], [0], [1], [0, 0, 1, 1], [], []>} : vector<8x8xf32>, vector<8x16xf32>, vector<8x16xf32> -> vector<8x16xf32>
    %56 = vector.extract_strided_slice %34 {offsets = [0, 16], sizes = [8, 16], strides = [1, 1]} : vector<8x96xf32> to vector<8x16xf32>
    %57 = vector.extract_strided_slice %34 {offsets = [0, 48], sizes = [8, 16], strides = [1, 1]} : vector<8x96xf32> to vector<8x16xf32>
    %58 = vector.extract_strided_slice %34 {offsets = [0, 80], sizes = [8, 16], strides = [1, 1]} : vector<8x96xf32> to vector<8x16xf32>
    %59 = tpu.transpose %57, [1, 0] : vector<8x16xf32> -> vector<16x8xf32>
    %cst_25 = arith.constant dense<0.000000e+00> : vector<8x8xf32>
    %60 = tpu.matmul %56, %59, %cst_25 {dimension_numbers = #tpu.dot_dimension_numbers<[1], [0], [0], [1], [0, 0, 1, 1], [], []>} : vector<8x16xf32>, vector<16x8xf32>, vector<8x8xf32> -> vector<8x8xf32>
    %cst_26 = arith.constant 2.500000e-01 : f32
    %61 = vector.broadcast %cst_26 : f32 to vector<8x8xf32>
    %62 = arith.mulf %60, %61 : vector<8x8xf32>
    %63 = vector.shape_cast %3 : vector<8xf32> to vector<1x8xf32>
    %64 = vector.broadcast %63 : vector<1x8xf32> to vector<8x8xf32>
    %65 = arith.addf %62, %64 : vector<8x8xf32>
    %cst_27 = arith.constant dense<0xFF800000> : vector<8xf32>
    %66 = vector.multi_reduction <maximumf>, %65, %cst_27 [1] : vector<8x8xf32> to vector<8xf32>
    %67 = vector.shape_cast %66 : vector<8xf32> to vector<8x1xf32>
    %68 = vector.broadcast %67 : vector<8x1xf32> to vector<8x8xf32>
    %69 = arith.subf %65, %68 : vector<8x8xf32>
    %70 = math.exp %69 : vector<8x8xf32>
    %cst_28 = arith.constant dense<0.000000e+00> : vector<8xf32>
    %71 = vector.multi_reduction <add>, %70, %cst_28 [1] : vector<8x8xf32> to vector<8xf32>
    %72 = vector.shape_cast %71 : vector<8xf32> to vector<8x1xf32>
    %73 = tpu.reciprocal %72 {approx = true} : vector<8x1xf32> -> vector<8x1xf32>
    %74 = vector.broadcast %73 : vector<8x1xf32> to vector<8x8xf32>
    %75 = arith.mulf %70, %74 : vector<8x8xf32>
    %cst_29 = arith.constant dense<0.000000e+00> : vector<8x16xf32>
    %76 = tpu.matmul %75, %58, %cst_29 {dimension_numbers = #tpu.dot_dimension_numbers<[1], [0], [0], [1], [0, 0, 1, 1], [], []>} : vector<8x8xf32>, vector<8x16xf32>, vector<8x16xf32> -> vector<8x16xf32>
    %77 = tpu.concatenate %55, %76 in 1 : vector<8x16xf32>, vector<8x16xf32> -> vector<8x32xf32>
    %c0_30 = arith.constant 0 : index
    %c0_31 = arith.constant 0 : index
    %c0_32 = arith.constant 0 : index
    %78 = vector.load %arg7[%c0_30, %c0_31, %c0_32] : memref<2x32x32xf32, #tpu.memory_space<vmem>>, vector<1x32x32xf32>
    %79 = vector.shape_cast %78 : vector<1x32x32xf32> to vector<32x32xf32>
    %cst_33 = arith.constant dense<0.000000e+00> : vector<8x32xf32>
    %80 = tpu.matmul %77, %79, %cst_33 {dimension_numbers = #tpu.dot_dimension_numbers<[1], [0], [0], [1], [0, 0, 1, 1], [], []>} : vector<8x32xf32>, vector<32x32xf32>, vector<8x32xf32> -> vector<8x32xf32>
    %c0_34 = arith.constant 0 : index
    %c0_35 = arith.constant 0 : index
    %c0_36 = arith.constant 0 : index
    %81 = vector.load %arg8[%c0_34, %c0_35, %c0_36] : memref<2x1x32xf32, #tpu.memory_space<vmem>>, vector<1x1x32xf32>
    %82 = vector.shape_cast %81 : vector<1x1x32xf32> to vector<1x32xf32>
    %83 = vector.broadcast %82 : vector<1x32xf32> to vector<8x32xf32>
    %84 = arith.addf %80, %83 : vector<8x32xf32>
    %85 = arith.addf %27, %84 : vector<8x32xf32>
    %c0_37 = arith.constant 0 : index
    %c0_38 = arith.constant 0 : index
    %c0_39 = arith.constant 0 : index
    %86 = vector.load %arg9[%c0_37, %c0_38, %c0_39] : memref<2x1x32xf32, #tpu.memory_space<vmem>>, vector<1x1x32xf32>
    %87 = vector.shape_cast %86 : vector<1x1x32xf32> to vector<1x32xf32>
    %c0_40 = arith.constant 0 : index
    %c0_41 = arith.constant 0 : index
    %c0_42 = arith.constant 0 : index
    %88 = vector.load %arg10[%c0_40, %c0_41, %c0_42] : memref<2x1x32xf32, #tpu.memory_space<vmem>>, vector<1x1x32xf32>
    %89 = vector.shape_cast %88 : vector<1x1x32xf32> to vector<1x32xf32>
    %cst_43 = arith.constant dense<0.000000e+00> : vector<8xf32>
    %90 = vector.multi_reduction <add>, %85, %cst_43 [1] : vector<8x32xf32> to vector<8xf32>
    %91 = vector.shape_cast %90 : vector<8xf32> to vector<8x1xf32>
    %cst_44 = arith.constant 3.200000e+01 : f32
    %92 = vector.broadcast %cst_44 : f32 to vector<8x1xf32>
    %93 = arith.divf %91, %92 : vector<8x1xf32>
    %94 = vector.broadcast %93 : vector<8x1xf32> to vector<8x32xf32>
    %95 = arith.subf %85, %94 : vector<8x32xf32>
    %96 = arith.mulf %95, %95 : vector<8x32xf32>
    %cst_45 = arith.constant dense<0.000000e+00> : vector<8xf32>
    %97 = vector.multi_reduction <add>, %96, %cst_45 [1] : vector<8x32xf32> to vector<8xf32>
    %98 = vector.shape_cast %97 : vector<8xf32> to vector<8x1xf32>
    %cst_46 = arith.constant 3.200000e+01 : f32
    %99 = vector.broadcast %cst_46 : f32 to vector<8x1xf32>
    %100 = arith.divf %98, %99 : vector<8x1xf32>
    %101 = vector.broadcast %93 : vector<8x1xf32> to vector<8x32xf32>
    %102 = arith.subf %85, %101 : vector<8x32xf32>
    %cst_47 = arith.constant 9.99999996E-13 : f32
    %103 = vector.broadcast %cst_47 : f32 to vector<8x1xf32>
    %104 = arith.addf %100, %103 : vector<8x1xf32>
    %105 = math.rsqrt %104 : vector<8x1xf32>
    %106 = vector.broadcast %105 : vector<8x1xf32> to vector<8x32xf32>
    %107 = arith.mulf %102, %106 : vector<8x32xf32>
    %108 = vector.broadcast %87 : vector<1x32xf32> to vector<8x32xf32>
    %109 = arith.mulf %107, %108 : vector<8x32xf32>
    %110 = vector.broadcast %89 : vector<1x32xf32> to vector<8x32xf32>
    %111 = arith.addf %109, %110 : vector<8x32xf32>
    %c0_48 = arith.constant 0 : index
    %c0_49 = arith.constant 0 : index
    %c0_50 = arith.constant 0 : index
    %112 = vector.load %arg11[%c0_48, %c0_49, %c0_50] : memref<2x32x64xf32, #tpu.memory_space<vmem>>, vector<1x32x64xf32>
    %113 = vector.shape_cast %112 : vector<1x32x64xf32> to vector<32x64xf32>
    %cst_51 = arith.constant dense<0.000000e+00> : vector<8x64xf32>
    %114 = tpu.matmul %111, %113, %cst_51 {dimension_numbers = #tpu.dot_dimension_numbers<[1], [0], [0], [1], [0, 0, 1, 1], [], []>} : vector<8x32xf32>, vector<32x64xf32>, vector<8x64xf32> -> vector<8x64xf32>
    %c0_52 = arith.constant 0 : index
    %c0_53 = arith.constant 0 : index
    %c0_54 = arith.constant 0 : index
    %115 = vector.load %arg12[%c0_52, %c0_53, %c0_54] : memref<2x1x64xf32, #tpu.memory_space<vmem>>, vector<1x1x64xf32>
    %116 = vector.shape_cast %115 : vector<1x1x64xf32> to vector<1x64xf32>
    %117 = vector.broadcast %116 : vector<1x64xf32> to vector<8x64xf32>
    %118 = arith.addf %114, %117 : vector<8x64xf32>
    %cst_55 = arith.constant 5.000000e-01 : f32
    %119 = vector.broadcast %cst_55 : f32 to vector<8x64xf32>
    %120 = arith.mulf %119, %118 : vector<8x64xf32>
    %cst_56 = arith.constant 4.471500e-02 : f32
    %121 = vector.broadcast %cst_56 : f32 to vector<8x64xf32>
    %122 = arith.mulf %121, %118 : vector<8x64xf32>
    %123 = arith.mulf %122, %118 : vector<8x64xf32>
    %124 = arith.mulf %123, %118 : vector<8x64xf32>
    %125 = arith.addf %118, %124 : vector<8x64xf32>
    %cst_57 = arith.constant 0.797884583 : f32
    %126 = vector.broadcast %cst_57 : f32 to vector<8x64xf32>
    %127 = arith.mulf %126, %125 : vector<8x64xf32>
    %128 = math.tanh %127 : vector<8x64xf32>
    %cst_58 = arith.constant 1.000000e+00 : f32
    %129 = vector.broadcast %cst_58 : f32 to vector<8x64xf32>
    %130 = arith.addf %129, %128 : vector<8x64xf32>
    %131 = arith.mulf %120, %130 : vector<8x64xf32>
    %c0_59 = arith.constant 0 : index
    %c0_60 = arith.constant 0 : index
    %c0_61 = arith.constant 0 : index
    %132 = vector.load %arg13[%c0_59, %c0_60, %c0_61] : memref<2x64x32xf32, #tpu.memory_space<vmem>>, vector<1x64x32xf32>
    %133 = vector.shape_cast %132 : vector<1x64x32xf32> to vector<64x32xf32>
    %cst_62 = arith.constant dense<0.000000e+00> : vector<8x32xf32>
    %134 = tpu.matmul %131, %133, %cst_62 {dimension_numbers = #tpu.dot_dimension_numbers<[1], [0], [0], [1], [0, 0, 1, 1], [], []>} : vector<8x64xf32>, vector<64x32xf32>, vector<8x32xf32> -> vector<8x32xf32>
    %c0_63 = arith.constant 0 : index
    %c0_64 = arith.constant 0 : index
    %c0_65 = arith.constant 0 : index
    %135 = vector.load %arg14[%c0_63, %c0_64, %c0_65] : memref<2x1x32xf32, #tpu.memory_space<vmem>>, vector<1x1x32xf32>
    %136 = vector.shape_cast %135 : vector<1x1x32xf32> to vector<1x32xf32>
    %137 = vector.broadcast %136 : vector<1x32xf32> to vector<8x32xf32>
    %138 = arith.addf %134, %137 : vector<8x32xf32>
    %139 = arith.addf %111, %138 : vector<8x32xf32>
    %c0_66 = arith.constant 0 : index
    %c0_67 = arith.constant 0 : index
    %c0_68 = arith.constant 0 : index
    %140 = vector.load %arg15[%c0_66, %c0_67, %c0_68] : memref<2x1x32xf32, #tpu.memory_space<vmem>>, vector<1x1x32xf32>
    %141 = vector.shape_cast %140 : vector<1x1x32xf32> to vector<1x32xf32>
    %c0_69 = arith.constant 0 : index
    %c0_70 = arith.constant 0 : index
    %c0_71 = arith.constant 0 : index
    %142 = vector.load %arg16[%c0_69, %c0_70, %c0_71] : memref<2x1x32xf32, #tpu.memory_space<vmem>>, vector<1x1x32xf32>
    %143 = vector.shape_cast %142 : vector<1x1x32xf32> to vector<1x32xf32>
    %cst_72 = arith.constant dense<0.000000e+00> : vector<8xf32>
    %144 = vector.multi_reduction <add>, %139, %cst_72 [1] : vector<8x32xf32> to vector<8xf32>
    %145 = vector.shape_cast %144 : vector<8xf32> to vector<8x1xf32>
    %cst_73 = arith.constant 3.200000e+01 : f32
    %146 = vector.broadcast %cst_73 : f32 to vector<8x1xf32>
    %147 = arith.divf %145, %146 : vector<8x1xf32>
    %148 = vector.broadcast %147 : vector<8x1xf32> to vector<8x32xf32>
    %149 = arith.subf %139, %148 : vector<8x32xf32>
    %150 = arith.mulf %149, %149 : vector<8x32xf32>
    %cst_74 = arith.constant dense<0.000000e+00> : vector<8xf32>
    %151 = vector.multi_reduction <add>, %150, %cst_74 [1] : vector<8x32xf32> to vector<8xf32>
    %152 = vector.shape_cast %151 : vector<8xf32> to vector<8x1xf32>
    %cst_75 = arith.constant 3.200000e+01 : f32
    %153 = vector.broadcast %cst_75 : f32 to vector<8x1xf32>
    %154 = arith.divf %152, %153 : vector<8x1xf32>
    %155 = vector.broadcast %147 : vector<8x1xf32> to vector<8x32xf32>
    %156 = arith.subf %139, %155 : vector<8x32xf32>
    %cst_76 = arith.constant 9.99999996E-13 : f32
    %157 = vector.broadcast %cst_76 : f32 to vector<8x1xf32>
    %158 = arith.addf %154, %157 : vector<8x1xf32>
    %159 = math.rsqrt %158 : vector<8x1xf32>
    %160 = vector.broadcast %159 : vector<8x1xf32> to vector<8x32xf32>
    %161 = arith.mulf %156, %160 : vector<8x32xf32>
    %162 = vector.broadcast %141 : vector<1x32xf32> to vector<8x32xf32>
    %163 = arith.mulf %161, %162 : vector<8x32xf32>
    %164 = vector.broadcast %143 : vector<1x32xf32> to vector<8x32xf32>
    %165 = arith.addf %163, %164 : vector<8x32xf32>
    %c1 = arith.constant 1 : index
    %c0_77 = arith.constant 0 : index
    %c0_78 = arith.constant 0 : index
    %166 = vector.load %arg5[%c1, %c0_77, %c0_78] : memref<2x32x96xf32, #tpu.memory_space<vmem>>, vector<1x32x96xf32>
    %167 = vector.shape_cast %166 : vector<1x32x96xf32> to vector<32x96xf32>
    %cst_79 = arith.constant dense<0.000000e+00> : vector<8x96xf32>
    %168 = tpu.matmul %165, %167, %cst_79 {dimension_numbers = #tpu.dot_dimension_numbers<[1], [0], [0], [1], [0, 0, 1, 1], [], []>} : vector<8x32xf32>, vector<32x96xf32>, vector<8x96xf32> -> vector<8x96xf32>
    %c1_80 = arith.constant 1 : index
    %c0_81 = arith.constant 0 : index
    %c0_82 = arith.constant 0 : index
    %169 = vector.load %arg6[%c1_80, %c0_81, %c0_82] : memref<2x1x96xf32, #tpu.memory_space<vmem>>, vector<1x1x96xf32>
    %170 = vector.shape_cast %169 : vector<1x1x96xf32> to vector<1x96xf32>
    %171 = vector.broadcast %170 : vector<1x96xf32> to vector<8x96xf32>
    %172 = arith.addf %168, %171 : vector<8x96xf32>
    %173 = vector.extract_strided_slice %172 {offsets = [0, 0], sizes = [8, 16], strides = [1, 1]} : vector<8x96xf32> to vector<8x16xf32>
    %174 = vector.extract_strided_slice %172 {offsets = [0, 32], sizes = [8, 16], strides = [1, 1]} : vector<8x96xf32> to vector<8x16xf32>
    %175 = vector.extract_strided_slice %172 {offsets = [0, 64], sizes = [8, 16], strides = [1, 1]} : vector<8x96xf32> to vector<8x16xf32>
    %176 = tpu.transpose %174, [1, 0] : vector<8x16xf32> -> vector<16x8xf32>
    %cst_83 = arith.constant dense<0.000000e+00> : vector<8x8xf32>
    %177 = tpu.matmul %173, %176, %cst_83 {dimension_numbers = #tpu.dot_dimension_numbers<[1], [0], [0], [1], [0, 0, 1, 1], [], []>} : vector<8x16xf32>, vector<16x8xf32>, vector<8x8xf32> -> vector<8x8xf32>
    %cst_84 = arith.constant 2.500000e-01 : f32
    %178 = vector.broadcast %cst_84 : f32 to vector<8x8xf32>
    %179 = arith.mulf %177, %178 : vector<8x8xf32>
    %180 = vector.shape_cast %3 : vector<8xf32> to vector<1x8xf32>
    %181 = vector.broadcast %180 : vector<1x8xf32> to vector<8x8xf32>
    %182 = arith.addf %179, %181 : vector<8x8xf32>
    %cst_85 = arith.constant dense<0xFF800000> : vector<8xf32>
    %183 = vector.multi_reduction <maximumf>, %182, %cst_85 [1] : vector<8x8xf32> to vector<8xf32>
    %184 = vector.shape_cast %183 : vector<8xf32> to vector<8x1xf32>
    %185 = vector.broadcast %184 : vector<8x1xf32> to vector<8x8xf32>
    %186 = arith.subf %182, %185 : vector<8x8xf32>
    %187 = math.exp %186 : vector<8x8xf32>
    %cst_86 = arith.constant dense<0.000000e+00> : vector<8xf32>
    %188 = vector.multi_reduction <add>, %187, %cst_86 [1] : vector<8x8xf32> to vector<8xf32>
    %189 = vector.shape_cast %188 : vector<8xf32> to vector<8x1xf32>
    %190 = tpu.reciprocal %189 {approx = true} : vector<8x1xf32> -> vector<8x1xf32>
    %191 = vector.broadcast %190 : vector<8x1xf32> to vector<8x8xf32>
    %192 = arith.mulf %187, %191 : vector<8x8xf32>
    %cst_87 = arith.constant dense<0.000000e+00> : vector<8x16xf32>
    %193 = tpu.matmul %192, %175, %cst_87 {dimension_numbers = #tpu.dot_dimension_numbers<[1], [0], [0], [1], [0, 0, 1, 1], [], []>} : vector<8x8xf32>, vector<8x16xf32>, vector<8x16xf32> -> vector<8x16xf32>
    %194 = vector.extract_strided_slice %172 {offsets = [0, 16], sizes = [8, 16], strides = [1, 1]} : vector<8x96xf32> to vector<8x16xf32>
    %195 = vector.extract_strided_slice %172 {offsets = [0, 48], sizes = [8, 16], strides = [1, 1]} : vector<8x96xf32> to vector<8x16xf32>
    %196 = vector.extract_strided_slice %172 {offsets = [0, 80], sizes = [8, 16], strides = [1, 1]} : vector<8x96xf32> to vector<8x16xf32>
    %197 = tpu.transpose %195, [1, 0] : vector<8x16xf32> -> vector<16x8xf32>
    %cst_88 = arith.constant dense<0.000000e+00> : vector<8x8xf32>
    %198 = tpu.matmul %194, %197, %cst_88 {dimension_numbers = #tpu.dot_dimension_numbers<[1], [0], [0], [1], [0, 0, 1, 1], [], []>} : vector<8x16xf32>, vector<16x8xf32>, vector<8x8xf32> -> vector<8x8xf32>
    %cst_89 = arith.constant 2.500000e-01 : f32
    %199 = vector.broadcast %cst_89 : f32 to vector<8x8xf32>
    %200 = arith.mulf %198, %199 : vector<8x8xf32>
    %201 = vector.shape_cast %3 : vector<8xf32> to vector<1x8xf32>
    %202 = vector.broadcast %201 : vector<1x8xf32> to vector<8x8xf32>
    %203 = arith.addf %200, %202 : vector<8x8xf32>
    %cst_90 = arith.constant dense<0xFF800000> : vector<8xf32>
    %204 = vector.multi_reduction <maximumf>, %203, %cst_90 [1] : vector<8x8xf32> to vector<8xf32>
    %205 = vector.shape_cast %204 : vector<8xf32> to vector<8x1xf32>
    %206 = vector.broadcast %205 : vector<8x1xf32> to vector<8x8xf32>
    %207 = arith.subf %203, %206 : vector<8x8xf32>
    %208 = math.exp %207 : vector<8x8xf32>
    %cst_91 = arith.constant dense<0.000000e+00> : vector<8xf32>
    %209 = vector.multi_reduction <add>, %208, %cst_91 [1] : vector<8x8xf32> to vector<8xf32>
    %210 = vector.shape_cast %209 : vector<8xf32> to vector<8x1xf32>
    %211 = tpu.reciprocal %210 {approx = true} : vector<8x1xf32> -> vector<8x1xf32>
    %212 = vector.broadcast %211 : vector<8x1xf32> to vector<8x8xf32>
    %213 = arith.mulf %208, %212 : vector<8x8xf32>
    %cst_92 = arith.constant dense<0.000000e+00> : vector<8x16xf32>
    %214 = tpu.matmul %213, %196, %cst_92 {dimension_numbers = #tpu.dot_dimension_numbers<[1], [0], [0], [1], [0, 0, 1, 1], [], []>} : vector<8x8xf32>, vector<8x16xf32>, vector<8x16xf32> -> vector<8x16xf32>
    %215 = tpu.concatenate %193, %214 in 1 : vector<8x16xf32>, vector<8x16xf32> -> vector<8x32xf32>
    %c1_93 = arith.constant 1 : index
    %c0_94 = arith.constant 0 : index
    %c0_95 = arith.constant 0 : index
    %216 = vector.load %arg7[%c1_93, %c0_94, %c0_95] : memref<2x32x32xf32, #tpu.memory_space<vmem>>, vector<1x32x32xf32>
    %217 = vector.shape_cast %216 : vector<1x32x32xf32> to vector<32x32xf32>
    %cst_96 = arith.constant dense<0.000000e+00> : vector<8x32xf32>
    %218 = tpu.matmul %215, %217, %cst_96 {dimension_numbers = #tpu.dot_dimension_numbers<[1], [0], [0], [1], [0, 0, 1, 1], [], []>} : vector<8x32xf32>, vector<32x32xf32>, vector<8x32xf32> -> vector<8x32xf32>
    %c1_97 = arith.constant 1 : index
    %c0_98 = arith.constant 0 : index
    %c0_99 = arith.constant 0 : index
    %219 = vector.load %arg8[%c1_97, %c0_98, %c0_99] : memref<2x1x32xf32, #tpu.memory_space<vmem>>, vector<1x1x32xf32>
    %220 = vector.shape_cast %219 : vector<1x1x32xf32> to vector<1x32xf32>
    %221 = vector.broadcast %220 : vector<1x32xf32> to vector<8x32xf32>
    %222 = arith.addf %218, %221 : vector<8x32xf32>
    %223 = arith.addf %165, %222 : vector<8x32xf32>
    %c1_100 = arith.constant 1 : index
    %c0_101 = arith.constant 0 : index
    %c0_102 = arith.constant 0 : index
    %224 = vector.load %arg9[%c1_100, %c0_101, %c0_102] : memref<2x1x32xf32, #tpu.memory_space<vmem>>, vector<1x1x32xf32>
    %225 = vector.shape_cast %224 : vector<1x1x32xf32> to vector<1x32xf32>
    %c1_103 = arith.constant 1 : index
    %c0_104 = arith.constant 0 : index
    %c0_105 = arith.constant 0 : index
    %226 = vector.load %arg10[%c1_103, %c0_104, %c0_105] : memref<2x1x32xf32, #tpu.memory_space<vmem>>, vector<1x1x32xf32>
    %227 = vector.shape_cast %226 : vector<1x1x32xf32> to vector<1x32xf32>
    %cst_106 = arith.constant dense<0.000000e+00> : vector<8xf32>
    %228 = vector.multi_reduction <add>, %223, %cst_106 [1] : vector<8x32xf32> to vector<8xf32>
    %229 = vector.shape_cast %228 : vector<8xf32> to vector<8x1xf32>
    %cst_107 = arith.constant 3.200000e+01 : f32
    %230 = vector.broadcast %cst_107 : f32 to vector<8x1xf32>
    %231 = arith.divf %229, %230 : vector<8x1xf32>
    %232 = vector.broadcast %231 : vector<8x1xf32> to vector<8x32xf32>
    %233 = arith.subf %223, %232 : vector<8x32xf32>
    %234 = arith.mulf %233, %233 : vector<8x32xf32>
    %cst_108 = arith.constant dense<0.000000e+00> : vector<8xf32>
    %235 = vector.multi_reduction <add>, %234, %cst_108 [1] : vector<8x32xf32> to vector<8xf32>
    %236 = vector.shape_cast %235 : vector<8xf32> to vector<8x1xf32>
    %cst_109 = arith.constant 3.200000e+01 : f32
    %237 = vector.broadcast %cst_109 : f32 to vector<8x1xf32>
    %238 = arith.divf %236, %237 : vector<8x1xf32>
    %239 = vector.broadcast %231 : vector<8x1xf32> to vector<8x32xf32>
    %240 = arith.subf %223, %239 : vector<8x32xf32>
    %cst_110 = arith.constant 9.99999996E-13 : f32
    %241 = vector.broadcast %cst_110 : f32 to vector<8x1xf32>
    %242 = arith.addf %238, %241 : vector<8x1xf32>
    %243 = math.rsqrt %242 : vector<8x1xf32>
    %244 = vector.broadcast %243 : vector<8x1xf32> to vector<8x32xf32>
    %245 = arith.mulf %240, %244 : vector<8x32xf32>
    %246 = vector.broadcast %225 : vector<1x32xf32> to vector<8x32xf32>
    %247 = arith.mulf %245, %246 : vector<8x32xf32>
    %248 = vector.broadcast %227 : vector<1x32xf32> to vector<8x32xf32>
    %249 = arith.addf %247, %248 : vector<8x32xf32>
    %c1_111 = arith.constant 1 : index
    %c0_112 = arith.constant 0 : index
    %c0_113 = arith.constant 0 : index
    %250 = vector.load %arg11[%c1_111, %c0_112, %c0_113] : memref<2x32x64xf32, #tpu.memory_space<vmem>>, vector<1x32x64xf32>
    %251 = vector.shape_cast %250 : vector<1x32x64xf32> to vector<32x64xf32>
    %cst_114 = arith.constant dense<0.000000e+00> : vector<8x64xf32>
    %252 = tpu.matmul %249, %251, %cst_114 {dimension_numbers = #tpu.dot_dimension_numbers<[1], [0], [0], [1], [0, 0, 1, 1], [], []>} : vector<8x32xf32>, vector<32x64xf32>, vector<8x64xf32> -> vector<8x64xf32>
    %c1_115 = arith.constant 1 : index
    %c0_116 = arith.constant 0 : index
    %c0_117 = arith.constant 0 : index
    %253 = vector.load %arg12[%c1_115, %c0_116, %c0_117] : memref<2x1x64xf32, #tpu.memory_space<vmem>>, vector<1x1x64xf32>
    %254 = vector.shape_cast %253 : vector<1x1x64xf32> to vector<1x64xf32>
    %255 = vector.broadcast %254 : vector<1x64xf32> to vector<8x64xf32>
    %256 = arith.addf %252, %255 : vector<8x64xf32>
    %cst_118 = arith.constant 5.000000e-01 : f32
    %257 = vector.broadcast %cst_118 : f32 to vector<8x64xf32>
    %258 = arith.mulf %257, %256 : vector<8x64xf32>
    %cst_119 = arith.constant 4.471500e-02 : f32
    %259 = vector.broadcast %cst_119 : f32 to vector<8x64xf32>
    %260 = arith.mulf %259, %256 : vector<8x64xf32>
    %261 = arith.mulf %260, %256 : vector<8x64xf32>
    %262 = arith.mulf %261, %256 : vector<8x64xf32>
    %263 = arith.addf %256, %262 : vector<8x64xf32>
    %cst_120 = arith.constant 0.797884583 : f32
    %264 = vector.broadcast %cst_120 : f32 to vector<8x64xf32>
    %265 = arith.mulf %264, %263 : vector<8x64xf32>
    %266 = math.tanh %265 : vector<8x64xf32>
    %cst_121 = arith.constant 1.000000e+00 : f32
    %267 = vector.broadcast %cst_121 : f32 to vector<8x64xf32>
    %268 = arith.addf %267, %266 : vector<8x64xf32>
    %269 = arith.mulf %258, %268 : vector<8x64xf32>
    %c1_122 = arith.constant 1 : index
    %c0_123 = arith.constant 0 : index
    %c0_124 = arith.constant 0 : index
    %270 = vector.load %arg13[%c1_122, %c0_123, %c0_124] : memref<2x64x32xf32, #tpu.memory_space<vmem>>, vector<1x64x32xf32>
    %271 = vector.shape_cast %270 : vector<1x64x32xf32> to vector<64x32xf32>
    %cst_125 = arith.constant dense<0.000000e+00> : vector<8x32xf32>
    %272 = tpu.matmul %269, %271, %cst_125 {dimension_numbers = #tpu.dot_dimension_numbers<[1], [0], [0], [1], [0, 0, 1, 1], [], []>} : vector<8x64xf32>, vector<64x32xf32>, vector<8x32xf32> -> vector<8x32xf32>
    %c1_126 = arith.constant 1 : index
    %c0_127 = arith.constant 0 : index
    %c0_128 = arith.constant 0 : index
    %273 = vector.load %arg14[%c1_126, %c0_127, %c0_128] : memref<2x1x32xf32, #tpu.memory_space<vmem>>, vector<1x1x32xf32>
    %274 = vector.shape_cast %273 : vector<1x1x32xf32> to vector<1x32xf32>
    %275 = vector.broadcast %274 : vector<1x32xf32> to vector<8x32xf32>
    %276 = arith.addf %272, %275 : vector<8x32xf32>
    %277 = arith.addf %249, %276 : vector<8x32xf32>
    %c1_129 = arith.constant 1 : index
    %c0_130 = arith.constant 0 : index
    %c0_131 = arith.constant 0 : index
    %278 = vector.load %arg15[%c1_129, %c0_130, %c0_131] : memref<2x1x32xf32, #tpu.memory_space<vmem>>, vector<1x1x32xf32>
    %279 = vector.shape_cast %278 : vector<1x1x32xf32> to vector<1x32xf32>
    %c1_132 = arith.constant 1 : index
    %c0_133 = arith.constant 0 : index
    %c0_134 = arith.constant 0 : index
    %280 = vector.load %arg16[%c1_132, %c0_133, %c0_134] : memref<2x1x32xf32, #tpu.memory_space<vmem>>, vector<1x1x32xf32>
    %281 = vector.shape_cast %280 : vector<1x1x32xf32> to vector<1x32xf32>
    %cst_135 = arith.constant dense<0.000000e+00> : vector<8xf32>
    %282 = vector.multi_reduction <add>, %277, %cst_135 [1] : vector<8x32xf32> to vector<8xf32>
    %283 = vector.shape_cast %282 : vector<8xf32> to vector<8x1xf32>
    %cst_136 = arith.constant 3.200000e+01 : f32
    %284 = vector.broadcast %cst_136 : f32 to vector<8x1xf32>
    %285 = arith.divf %283, %284 : vector<8x1xf32>
    %286 = vector.broadcast %285 : vector<8x1xf32> to vector<8x32xf32>
    %287 = arith.subf %277, %286 : vector<8x32xf32>
    %288 = arith.mulf %287, %287 : vector<8x32xf32>
    %cst_137 = arith.constant dense<0.000000e+00> : vector<8xf32>
    %289 = vector.multi_reduction <add>, %288, %cst_137 [1] : vector<8x32xf32> to vector<8xf32>
    %290 = vector.shape_cast %289 : vector<8xf32> to vector<8x1xf32>
    %cst_138 = arith.constant 3.200000e+01 : f32
    %291 = vector.broadcast %cst_138 : f32 to vector<8x1xf32>
    %292 = arith.divf %290, %291 : vector<8x1xf32>
    %293 = vector.broadcast %285 : vector<8x1xf32> to vector<8x32xf32>
    %294 = arith.subf %277, %293 : vector<8x32xf32>
    %cst_139 = arith.constant 9.99999996E-13 : f32
    %295 = vector.broadcast %cst_139 : f32 to vector<8x1xf32>
    %296 = arith.addf %292, %295 : vector<8x1xf32>
    %297 = math.rsqrt %296 : vector<8x1xf32>
    %298 = vector.broadcast %297 : vector<8x1xf32> to vector<8x32xf32>
    %299 = arith.mulf %294, %298 : vector<8x32xf32>
    %300 = vector.broadcast %279 : vector<1x32xf32> to vector<8x32xf32>
    %301 = arith.mulf %299, %300 : vector<8x32xf32>
    %302 = vector.broadcast %281 : vector<1x32xf32> to vector<8x32xf32>
    %303 = arith.addf %301, %302 : vector<8x32xf32>
    %c0_140 = arith.constant 0 : index
    %c0_141 = arith.constant 0 : index
    %c0_142 = arith.constant 0 : index
    %304 = vector.load %arg19[%c0_140, %c0_141, %c0_142] : memref<1x8x32xf32, #tpu.memory_space<vmem>>, vector<1x8x32xf32>
    %305 = vector.shape_cast %304 : vector<1x8x32xf32> to vector<8x32xf32>
    %306 = vector.shape_cast %303 : vector<8x32xf32> to vector<1x8x32xf32>
    tpu.vector_store %arg19[%c0_140, %c0_141, %c0_142], %306 {strides = array<i32>} : memref<1x8x32xf32, #tpu.memory_space<vmem>>, vector<1x8x32xf32>,
    %307 = vector.extract_strided_slice %303 {offsets = [0, 0], sizes = [1, 32], strides = [1, 1]} : vector<8x32xf32> to vector<1x32xf32>
    %c0_143 = arith.constant 0 : index
    %c0_144 = arith.constant 0 : index
    %308 = vector.load %arg17[%c0_143, %c0_144] : memref<32x32xf32, #tpu.memory_space<vmem>>, vector<32x32xf32>
    %cst_145 = arith.constant dense<0.000000e+00> : vector<1x32xf32>
    %309 = tpu.matmul %307, %308, %cst_145 {dimension_numbers = #tpu.dot_dimension_numbers<[1], [0], [0], [1], [0, 0, 1, 1], [], []>} : vector<1x32xf32>, vector<32x32xf32>, vector<1x32xf32> -> vector<1x32xf32>
    %c0_146 = arith.constant 0 : index
    %c0_147 = arith.constant 0 : index
    %310 = vector.load %arg18[%c0_146, %c0_147] : memref<1x32xf32, #tpu.memory_space<vmem>>, vector<1x32xf32>
    %311 = arith.addf %309, %310 : vector<1x32xf32>
    %312 = math.tanh %311 : vector<1x32xf32>
    %c0_148 = arith.constant 0 : index
    %c0_149 = arith.constant 0 : index
    %c0_150 = arith.constant 0 : index
    %313 = vector.load %arg20[%c0_148, %c0_149, %c0_150] : memref<1x1x32xf32, #tpu.memory_space<vmem>>, vector<1x1x32xf32>
    %314 = vector.shape_cast %313 : vector<1x1x32xf32> to vector<1x32xf32>
    %315 = vector.shape_cast %312 : vector<1x32xf32> to vector<1x1x32xf32>
    tpu.vector_store %arg20[%c0_148, %c0_149, %c0_150], %315 {strides = array<i32>} : memref<1x1x32xf32, #tpu.memory_space<vmem>>, vector<1x1x32xf32>,
    return
  }
  func.func @transform_0(%arg0: i32) -> (i32, i32, i32) {
    %c0_i32 = arith.constant 0 : i32
    %c0_i32_0 = arith.constant 0 : i32
    %c0_i32_1 = arith.constant 0 : i32
    return %arg0, %c0_i32, %c0_i32_0 : i32, i32, i32
  }
  func.func @transform_1(%arg0: i32) -> (i32, i32, i32) {
    %c0_i32 = arith.constant 0 : i32
    %c0_i32_0 = arith.constant 0 : i32
    %c0_i32_1 = arith.constant 0 : i32
    return %arg0, %c0_i32, %c0_i32_0 : i32, i32, i32
  }
  func.func @transform_2(%arg0: i32) -> (i32, i32) {
    %c0_i32 = arith.constant 0 : i32
    %c0_i32_0 = arith.constant 0 : i32
    %c0_i32_1 = arith.constant 0 : i32
    return %c0_i32, %c0_i32_0 : i32, i32
  }
  func.func @transform_3(%arg0: i32) -> (i32, i32) {
    %c0_i32 = arith.constant 0 : i32
    %c0_i32_0 = arith.constant 0 : i32
    %c0_i32_1 = arith.constant 0 : i32
    return %c0_i32, %c0_i32_0 : i32, i32
  }
  func.func @transform_4(%arg0: i32) -> (i32, i32, i32) {
    %c0_i32 = arith.constant 0 : i32
    %c0_i32_0 = arith.constant 0 : i32
    %c0_i32_1 = arith.constant 0 : i32
    %c0_i32_2 = arith.constant 0 : i32
    return %c0_i32, %c0_i32_0, %c0_i32_1 : i32, i32, i32
  }
  func.func @transform_5(%arg0: i32) -> (i32, i32, i32) {
    %c0_i32 = arith.constant 0 : i32
    %c0_i32_0 = arith.constant 0 : i32
    %c0_i32_1 = arith.constant 0 : i32
    %c0_i32_2 = arith.constant 0 : i32
    return %c0_i32, %c0_i32_0, %c0_i32_1 : i32, i32, i32
  }
  func.func @transform_6(%arg0: i32) -> (i32, i32, i32) {
    %c0_i32 = arith.constant 0 : i32
    %c0_i32_0 = arith.constant 0 : i32
    %c0_i32_1 = arith.constant 0 : i32
    %c0_i32_2 = arith.constant 0 : i32
    return %c0_i32, %c0_i32_0, %c0_i32_1 : i32, i32, i32
  }
  func.func @transform_7(%arg0: i32) -> (i32, i32, i32) {
    %c0_i32 = arith.constant 0 : i32
    %c0_i32_0 = arith.constant 0 : i32
    %c0_i32_1 = arith.constant 0 : i32
    %c0_i32_2 = arith.constant 0 : i32
    return %c0_i32, %c0_i32_0, %c0_i32_1 : i32, i32, i32
  }
  func.func @transform_8(%arg0: i32) -> (i32, i32, i32) {
    %c0_i32 = arith.constant 0 : i32
    %c0_i32_0 = arith.constant 0 : i32
    %c0_i32_1 = arith.constant 0 : i32
    %c0_i32_2 = arith.constant 0 : i32
    return %c0_i32, %c0_i32_0, %c0_i32_1 : i32, i32, i32
  }
  func.func @transform_9(%arg0: i32) -> (i32, i32, i32) {
    %c0_i32 = arith.constant 0 : i32
    %c0_i32_0 = arith.constant 0 : i32
    %c0_i32_1 = arith.constant 0 : i32
    %c0_i32_2 = arith.constant 0 : i32
    return %c0_i32, %c0_i32_0, %c0_i32_1 : i32, i32, i32
  }
  func.func @transform_10(%arg0: i32) -> (i32, i32, i32) {
    %c0_i32 = arith.constant 0 : i32
    %c0_i32_0 = arith.constant 0 : i32
    %c0_i32_1 = arith.constant 0 : i32
    %c0_i32_2 = arith.constant 0 : i32
    return %c0_i32, %c0_i32_0, %c0_i32_1 : i32, i32, i32
  }
  func.func @transform_11(%arg0: i32) -> (i32, i32, i32) {
    %c0_i32 = arith.constant 0 : i32
    %c0_i32_0 = arith.constant 0 : i32
    %c0_i32_1 = arith.constant 0 : i32
    %c0_i32_2 = arith.constant 0 : i32
    return %c0_i32, %c0_i32_0, %c0_i32_1 : i32, i32, i32
  }
  func.func @transform_12(%arg0: i32) -> (i32, i32, i32) {
    %c0_i32 = arith.constant 0 : i32
    %c0_i32_0 = arith.constant 0 : i32
    %c0_i32_1 = arith.constant 0 : i32
    %c0_i32_2 = arith.constant 0 : i32
    return %c0_i32, %c0_i32_0, %c0_i32_1 : i32, i32, i32
  }
  func.func @transform_13(%arg0: i32) -> (i32, i32, i32) {
    %c0_i32 = arith.constant 0 : i32
    %c0_i32_0 = arith.constant 0 : i32
    %c0_i32_1 = arith.constant 0 : i32
    %c0_i32_2 = arith.constant 0 : i32
    return %c0_i32, %c0_i32_0, %c0_i32_1 : i32, i32, i32
  }
  func.func @transform_14(%arg0: i32) -> (i32, i32, i32) {
    %c0_i32 = arith.constant 0 : i32
    %c0_i32_0 = arith.constant 0 : i32
    %c0_i32_1 = arith.constant 0 : i32
    %c0_i32_2 = arith.constant 0 : i32
    return %c0_i32, %c0_i32_0, %c0_i32_1 : i32, i32, i32
  }
  func.func @transform_15(%arg0: i32) -> (i32, i32, i32) {
    %c0_i32 = arith.constant 0 : i32
    %c0_i32_0 = arith.constant 0 : i32
    %c0_i32_1 = arith.constant 0 : i32
    %c0_i32_2 = arith.constant 0 : i32
    return %c0_i32, %c0_i32_0, %c0_i32_1 : i32, i32, i32
  }
  func.func @transform_16(%arg0: i32) -> (i32, i32) {
    %c0_i32 = arith.constant 0 : i32
    %c0_i32_0 = arith.constant 0 : i32
    %c0_i32_1 = arith.constant 0 : i32
    return %c0_i32, %c0_i32_0 : i32, i32
  }
  func.func @transform_17(%arg0: i32) -> (i32, i32) {
    %c0_i32 = arith.constant 0 : i32
    %c0_i32_0 = arith.constant 0 : i32
    %c0_i32_1 = arith.constant 0 : i32
    return %c0_i32, %c0_i32_0 : i32, i32
  }
  func.func @transform_18(%arg0: i32) -> (i32, i32, i32) {
    %c0_i32 = arith.constant 0 : i32
    %c0_i32_0 = arith.constant 0 : i32
    %c0_i32_1 = arith.constant 0 : i32
    return %arg0, %c0_i32, %c0_i32_0 : i32, i32, i32
  }
  func.func @transform_19(%arg0: i32) -> (i32, i32, i32) {
    %c0_i32 = arith.constant 0 : i32
    %c0_i32_0 = arith.constant 0 : i32
    %c0_i32_1 = arith.constant 0 : i32
    return %arg0, %c0_i32, %c0_i32_0 : i32, i32, i32
  }
}

</mosaic_0001>

<bundles_post_ra>
// kernel: tpu_custom_call.1
= control target key start
LH: loop header
LB: loop body
LE: loop exit
PB: predicated region body
PF: predicated region fallthrough
CT: control target
= control target key end

     0   :  { %s3891_s0 = inlined_call_operand.hbm [shape: f32[2,8,32], index: 0, kind: input, shape index: {}]   ;;  %s3892_s1 = inlined_call_operand.hbm [shape: f32[2,1,8], index: 1, kind: input, shape index: {}]   ;;  %s3893_s2 = inlined_call_operand.hbm [shape: f32[1,32], index: 2, kind: input, shape index: {}]   ;;  %s3894_s3 = inlined_call_operand.hbm [shape: f32[1,32], index: 3, kind: input, shape index: {}]   ;;  %s3895_s4 = inlined_call_operand.vmem [shape: f32[2,32,96], index: 4, kind: input, shape index: {}]   ;;  %s3896_s5 = inlined_call_operand.vmem [shape: f32[2,1,96], index: 5, kind: input, shape index: {}]   ;;  %s3897_s6 = inlined_call_operand.vmem [shape: f32[2,32,32], index: 6, kind: input, shape index: {}]   ;;  %s3898_s7 = inlined_call_operand.vmem [shape: f32[2,1,32], index: 7, kind: input, shape index: {}]   ;;  %s3899_s8 = inlined_call_operand.vmem [shape: f32[2,1,32], index: 8, kind: input, shape index: {}]   ;;  %s3900_s9 = inlined_call_operand.vmem [shape: f32[2,1,32], index: 9, kind: input, shape index: {}]   ;;  %s3901_s10 = inlined_call_operand.vmem [shape: f32[2,32,64], index: 10, kind: input, shape index: {}]   ;;  %s3902_s11 = inlined_call_operand.vmem [shape: f32[2,1,64], index: 11, kind: input, shape index: {}]   ;;  %s3903_s12 = inlined_call_operand.vmem [shape: f32[2,64,32], index: 12, kind: input, shape index: {}]   ;;  %s3904_s13 = inlined_call_operand.vmem [shape: f32[2,1,32], index: 13, kind: input, shape index: {}]   ;;  %s3905_s14 = inlined_call_operand.vmem [shape: f32[2,1,32], index: 14, kind: input, shape index: {}]   ;;  %s3906_s15 = inlined_call_operand.vmem [shape: f32[2,1,32], index: 15, kind: input, shape index: {}]   ;;  %s3907_s16 = inlined_call_operand.hbm [shape: f32[32,32], index: 16, kind: input, shape index: {}]   ;;  %s3908_s17 = inlined_call_operand.vmem [shape: f32[1,32], index: 17, kind: input, shape index: {}]   ;;  %s3909_s18 = inlined_call_operand.hbm [shape: f32[2,8,32], index: 18, kind: output, shape index: {0}]   ;;  %s3910_s19 = inlined_call_operand.hbm [shape: f32[2,1,32], index: 19, kind: output, shape index: {1}]  }
   0x1   :  { %3928 = sst [smem:[#allocation26_spill]] %s3891_s0 }
   0x2   :  { %3929 = sst [smem:[#allocation27_spill]] %s3892_s1 }
   0x3   :  { %3930 = sst [smem:[#allocation28_spill]] %s3893_s2 }
   0x4   :  { %3931 = sst [smem:[#allocation29_spill]] %s3894_s3 }
   0x5   :  { %3932 = sst [smem:[#allocation30_spill]] %s3895_s4 }
   0x6   :  { %3933 = sst [smem:[#allocation31_spill]] %s3906_s15 }
   0x7   :  { %3934 = sst [smem:[#allocation32_spill]] %s3907_s16 }
   0x8   :  { %3935 = sst [smem:[#allocation33_spill]] %s3908_s17 }
   0x9   :  { %3936 = sst [smem:[#allocation34_spill]] %s3909_s18 }
   0xa   :  { %3937 = sst [smem:[#allocation35_spill]] %s3910_s19 }
   0xb   :  { %25 = vsyncpa [#allocation3], 0 }
   0xc   :  { %27 = vsyncpa [#allocation3 + $0x1], 0 }
   0xd   :  { %28 = vsyncpa [#allocation6], 0 }
   0xe   :  { %30 = vsyncpa [#allocation6 + $0x1], 0 }
   0xf   :  { %31 = vsyncpa [#allocation9], 0 }
  0x10   :  { %32 = vsyncpa [#allocation4], 0 }
  0x11   :  { %34 = vsyncpa [#allocation4 + $0x1], 0 }
  0x12   :  { %35 = vsyncpa [#allocation13], 0 }
  0x13   :  { %37 = vsyncpa [#allocation13 + $0x1], 0  ;;  %s3308_s0 = smov 0   ;;  %s3310_s30 = smov 0  }
  0x14   :  { %s3312_s20 = smov 0   ;;  %s3314_s21 = smov 0  }
  0x15 LB: > { %3938 = sst [smem:[#allocation20_spill]] %s3177_s0  ;;  %s3329_s1 = sadd.s32 4294967295, %s3189_s21   ;;  %s3189_s21 = sphi %s3314_s21, %s3974_s21   ;;  %s3185_s20 = sphi %s3312_s20, %s3976_s20   ;;  %s3181_s30 = sphi %s3310_s30, %s3978_s30   ;;  %s3177_s0 = sphi %s3308_s0, %s3977_s0  }
  0x16   : > { %3939 = sst [smem:[#allocation21_spill]] %s3185_s20  ;;  %s2508_s22 = sadd.s32 4294967294, %s3189_s21  }
  0x17   : > { %p63_p0 = scmp.ne.s32.totalorder %s3181_s30, %s3177_s0  ;;  %p3916_p1 = scmp.eq.s32.totalorder %s3329_s1, 0 }
  0x18   : > { %p455_p3 = scmp.eq.s32.totalorder %s2508_s22, 1  ;;  %p2509_p5 = scmp.ge.s32.totalorder %s3189_s21, 1 }
  0x19   : > { %p3338_p4 = por %p3916_p1, %p63_p0  ;;  %p488_p7 = scmp.lt.s32.totalorder %s3189_s21, 3 }
  0x1a   : > { %p3343_p6 = por %p455_p3, %p63_p0  ;;  %s3191_s25 = smov [#allocation7]  }
  0x1b   : > { %s3940_s2 = scalar_select %p3338_p4, 1, 0 }
  0x1c   : > { %s3941_s23 = scalar_select %p3343_p6, 1, 0 }
  0x1d   : > { %p3348_p8 = pnand %p2509_p5, %p488_p7  ;;  %s501_s3 = sshll.u32 %s3191_s25, 4  ;;  %s502_s3 = int_to_ptr.vmem [resolvable:$true] %s501_s3 }
  0x1e   : > { %3942 = sst [smem:[#allocation22_spill]] %s3941_s23  ;;  %s3192_s26 = smov [#allocation8]  }
  0x1f   : > { %s3943_s24 = scalar_select %p3348_p8, 1, 0 }
  0x20   : > { %p2840_p10 = pneg %p3348_p8  ;;  %s512_s27 = sshll.u32 %s3192_s26, 4  ;;  %s513_s27 = int_to_ptr.vmem [resolvable:$true] %s512_s27 }
  0x21   : > { %s3193_s29 = smov [#allocation10]   ;;  %s2960_s25 = scalar_lea.vmem %s502_s3, 16 }
  0x22   : > { %p3357_p11 = pnand %p2840_p10, %p3916_p1  ;;  %s558_s22 = sshll.u32 %s3193_s29, 4  ;;  %s3361_s22 = int_to_ptr.vmem [resolvable:$true] %s558_s22 }
  0x23   : > { %p2961_p13 = scmp.ne.s32.totalorder %s502_s3, %s2960_s25  ;;  %s2967_s26 = scalar_lea.vmem %s502_s3, 32 }
  0x24   : > { %p2951_p12 = pneg %p3357_p11  ;;  %p2968_p5 = scmp.lt.s32.totalorder %s502_s3, %s502_s3 }
  0x25   : > { %p2969_p7 = scmp.lt.s32.totalorder %s2967_s26, %s2960_s25 }
  0x26   : > { %p2963_p0 = pnand %p2961_p13, %p2951_p12 }
  0x27   : > { %p2970_p10 = por %p2969_p7, %p2968_p5 }
  0x28   : > { %p2964_p3 = pneg %p2963_p0 }
  0x2a   : > { %p2971_p9 = pnand %p2970_p10, %p2964_p3 }
  0x2c   : > { %2974 = shalt.err (!%p2971_p9)
}
  0x2d   : > { %s3945_s0 = sld [smem:[#allocation28_spill]]  ;;  %s2986_s19 = scalar_lea.vmem %s513_s27, 16 }
  0x2e   : > { %p2987_p1 = scmp.ne.s32.totalorder %s513_s27, %s2986_s19  ;;  %s2993_s17 = scalar_lea.vmem %s513_s27, 32 }
  0x2f   : > { %p2994_p0 = scmp.lt.s32.totalorder %s513_s27, %s513_s27  ;;  %p2995_p6 = scmp.lt.s32.totalorder %s2993_s17, %s2986_s19 }
  0x30   : > { %p2989_p2 = pnand %p2987_p1, %p2951_p12 }
  0x31   : > { %p2996_p4 = por %p2995_p6, %p2994_p0 }
  0x32   : > { %p2990_p13 = pneg %p2989_p2 }
  0x33   : > { %2843 = dma.hbm_to_vmem [thread:$0]  (!%p3357_p11), %s3945_s0, 16, %s502_s3, [#allocation6]  }
  0x34   : > { %p2997_p5 = pnand %p2996_p4, %p2990_p13 }
  0x36   : > { %3000 = shalt.err (!%p2997_p5)
}
  0x37   : > { %s3946_s18 = sld [smem:[#allocation29_spill]]  ;;  %s3012_s0 = scalar_lea.vmem %s3361_s22, 512 }
  0x38   : > { %p3013_p9 = scmp.ne.s32.totalorder %s3361_s22, %s3012_s0  ;;  %p3020_p6 = scmp.lt.s32.totalorder %s3361_s22, %s3361_s22 }
  0x39   : > { %p3021_p4 = scmp.lt.s32.totalorder %s3012_s0, %s3012_s0 }
  0x3a   : > { %p3015_p1 = pnand %p3013_p9, %p2951_p12 }
  0x3b   : > { %p3022_p3 = por %p3021_p4, %p3020_p6 }
  0x3c   : > { %p3016_p2 = pneg %p3015_p1 }
  0x3d   : > { %2846 = dma.hbm_to_vmem [thread:$0]  (!%p3357_p11), %s3946_s18, 16, %s513_s27, [#allocation9]  }
  0x3e   : > { %p3023_p7 = pnand %p3022_p3, %p3016_p2 }
  0x40   : > { %3026 = shalt.err (!%p3023_p7)
}
  0x41   : > { %s3194_s17 = smov 128   ;;  %s3195_s18 = smov 8  }
  0x42   : > { %s3947_s16 = sld [smem:[#allocation32_spill]]  ;;  %s3395_s3 = sadd.s32 1, %s3189_s21  }
  0x43   : > { %3948 = sst [smem:[#allocation23_spill]] %s3395_s3  ;;  %s47_s27 = ssub.s32 %s3189_s21, %s3395_s3 }
  0x44   : > { %s50_s29 = sadd.s32 1, %s3185_s20  ;;  %p48_p12 = scmp.eq.s32.totalorder %s47_s27, 0 }
  0x45   : > { %p57_p10 = scmp.ne.s32.totalorder %s3185_s20, %s3181_s30  ;;  %p58_p13 = scmp.eq.s32.totalorder %s3189_s21, 0 }
  0x46   : > { %p2867_p0 = scmp.lt.s32.totalorder %s3189_s21, 2  ;;  %p3950_p9 = scmp.eq.s32.totalorder %s3329_s1, 1 }
  0x47   : > { %s3405_s25 = scalar_select %p48_p12, %s3185_s20, %s50_s29  }
  0x48   : > { %2849 = dma.hbm_to_vmem [thread:$0]  (!%p3357_p11), %s3947_s16, 512, %s3361_s22, [#allocation9], %s3194_s17, %s3194_s17, %s3195_s18  }
  0x49   : > { %3949 = sst [smem:[#allocation24_spill]] %s3405_s25  ;;  %p59_p5 = por %p58_p13, %p57_p10 }
  0x4a   : > { %p3409_p1 = por %p3950_p9, %p57_p10  ;;  %s3414_s26 = sand.u32 1, %s3185_s20  }
  0x4b   : > { %s2515_s22 = sshll.u32 %s3189_s21, 7  ;;  %s2514_s0 = sshll.u32 %s3414_s26, 3 }
  0x4c   : > { %s3951_s28 = scalar_select %p3409_p1, 1, 0 }
  0x4d   : > { %s3953_s19 = sld [smem:[#allocation26_spill]]  ;;  %s579_s27 = scalar_lea.vmem [#allocation2], %s2514_s0 }
  0x4e   : > { %3952 = sst [smem:[#allocation25_spill]] %s3951_s28  ;;  %s586_s29 = sshll.u32 %s579_s27, 4  ;;  %s587_s29 = int_to_ptr.vmem [resolvable:$true] %s586_s29 }
  0x4f   : > { %p3423_p11 = pnand %p2867_p0, %p59_p5  ;;  %s576_s20 = scalar_lea.sflag [#allocation3], %s3414_s26 }
  0x51   : > { %p3029_p6 = pneg %p3423_p11 }
  0x53   : > { %s3421_s23 = scalar_lea.hbm %s3953_s19, %s2515_s22  ;;  %s3032_s17 = scalar_lea.hbm %s3953_s19, 256 }
  0x54   : > { %s3027_s3 = scalar_lea.hbm %s3421_s23, 128  ;;  %p3033_p7 = scmp.lt.s32.totalorder %s3421_s23, %s3953_s19 }
  0x55   : > { %p3028_p2 = scmp.ne.s32.totalorder %s3421_s23, %s3027_s3  ;;  %p3034_p12 = scmp.lt.s32.totalorder %s3032_s17, %s3027_s3 }
  0x57   : > { %p3030_p4 = pnand %p3029_p6, %p3028_p2  ;;  %p3035_p10 = por %p3034_p12, %p3033_p7 }
  0x59   : > { %p3031_p3 = pneg %p3030_p4 }
  0x5b   : > { %p3036_p13 = pnand %p3035_p10, %p3031_p3 }
  0x5d   : > { %3039 = shalt.err (!%p3036_p13)
}
  0x5e   : > { %s3040_s25 = scalar_lea.vmem %s587_s29, 128  ;;  %s3196_s28 = smov [#allocation2]  }
  0x5f   : > { %p3041_p0 = scmp.ne.s32.totalorder %s587_s29, %s3040_s25  ;;  %s3045_s15 = sshll.u32 %s3196_s28, 4  ;;  %s3046_s15 = int_to_ptr.vmem [resolvable:$false] %s3045_s15 }
  0x60   : > { %s3047_s22 = scalar_lea.vmem %s3046_s15, 256  ;;  %p3048_p2 = scmp.lt.s32.totalorder %s587_s29, %s3046_s15 }
  0x61   : > { %p3043_p5 = pnand %p3041_p0, %p3029_p6  ;;  %p3049_p4 = scmp.lt.s32.totalorder %s3047_s22, %s3040_s25 }
  0x63   : > { %p3044_p9 = pneg %p3043_p5  ;;  %p3050_p1 = por %p3049_p4, %p3048_p2 }
  0x65   : > { %p3051_p8 = pnand %p3050_p1, %p3044_p9 }
  0x67   : > { %3054 = shalt.err (!%p3051_p8)
}
  0x68   : > { %2853 = dma.hbm_to_vmem [thread:$0]  (!%p3423_p11), %s3421_s23, 128, %s587_s29, %s576_s20  }
  0x69   : > { %s2516_s3 = sshll.u32 %s3189_s21, 4  ;;  %s3955_s18 = sld [smem:[#allocation27_spill]] }
  0x6a   : > { %s596_s15 = scalar_lea.vmem [#allocation5], %s3414_s26  ;;  %s3956_s27 = sand.u32 1, %s3189_s21  }
  0x6b   : > { %s603_s25 = sshll.u32 %s596_s15, 4  ;;  %s594_s22 = scalar_lea.sflag [#allocation6], %s3956_s27  ;;  %s604_s25 = int_to_ptr.vmem [resolvable:$true] %s603_s25 }
  0x6f   : > { %s3453_s28 = scalar_lea.hbm %s3955_s18, %s2516_s3  ;;  %s3060_s29 = scalar_lea.hbm %s3955_s18, 32 }
  0x70   : > { %s3055_s19 = scalar_lea.hbm %s3453_s28, 16  ;;  %p3061_p7 = scmp.lt.s32.totalorder %s3453_s28, %s3955_s18 }
  0x71   : > { %p3056_p8 = scmp.ne.s32.totalorder %s3453_s28, %s3055_s19  ;;  %p3062_p12 = scmp.lt.s32.totalorder %s3060_s29, %s3055_s19 }
  0x73   : > { %p3058_p1 = pnand %p3056_p8, %p3029_p6  ;;  %p3063_p10 = por %p3062_p12, %p3061_p7 }
  0x75   : > { %p3059_p3 = pneg %p3058_p1 }
  0x77   : > { %p3064_p13 = pnand %p3063_p10, %p3059_p3 }
  0x79   : > { %3067 = shalt.err (!%p3064_p13)
}
  0x7a   : > { %s3068_s26 = scalar_lea.vmem %s604_s25, 16  ;;  %s3197_s17 = smov [#allocation5]  }
  0x7b   : > { %p3069_p0 = scmp.ne.s32.totalorder %s604_s25, %s3068_s26  ;;  %s3073_s15 = sshll.u32 %s3197_s17, 4  ;;  %s3074_s15 = int_to_ptr.vmem [resolvable:$false] %s3073_s15 }
  0x7c   : > { %s3075_s27 = scalar_lea.vmem %s3074_s15, 32  ;;  %p3076_p2 = scmp.lt.s32.totalorder %s604_s25, %s3074_s15 }
  0x7d   : > { %p3071_p5 = pnand %p3069_p0, %p3029_p6  ;;  %p3077_p4 = scmp.lt.s32.totalorder %s3075_s27, %s3068_s26 }
  0x7f   : > { %p3072_p9 = pneg %p3071_p5  ;;  %p3078_p8 = por %p3077_p4, %p3076_p2 }
  0x81   : > { %p3079_p1 = pnand %p3078_p8, %p3072_p9 }
  0x83   : > { %3082 = shalt.err (!%p3079_p1)
}
  0x84   : > { %2856 = dma.hbm_to_vmem [thread:$0]  (!%p3423_p11), %s3453_s28, 16, %s604_s25, %s594_s22  }
  0x85   : > { %p3957_p3 = scmp.ne.s32.totalorder %s3943_s24, 0 }
  0x86   : > { %s3479_s19 = sand.u32 (!%p3957_p3), 1, %s3181_s30   ;;  %p3958_p6 = scmp.ne.s32.totalorder (!%p3957_p3), %s3940_s2, 0 }
  0x87   : > { %612 = sbr.rel (%p3957_p3) target bundleno = 5927 (0x1727), region = 92  ;;  %s2518_s20 = sshll.u32 (!%p3957_p3), %s3479_s19, 3 }
  0x88   : > { %s615_s23 = scalar_lea.sflag (!%p3957_p3), [#allocation3], %s3479_s19  ;;  %s618_s29 = scalar_lea.vmem (!%p3957_p3), [#allocation2], %s2518_s20 }
  0x8c   : > { %3152 = dma.done.wait (%p3958_p6), %s615_s23, 128  }
  0x8d   : > { %3154 = vsyncadd (%p3958_p6), %s615_s23, 4294967168  ;;  %s623_s16 = sand.u32 1, %s3329_s1   ;;  %s626_s28 = scalar_lea.vmem [#allocation5], %s3479_s19 }
  0x8e   : > { %s624_s24 = scalar_lea.sflag [#allocation6], %s623_s16 }
  0x8f   : > { %3156 = dma.done.wait (%p3958_p6), %s624_s24, 16  }
  0x90   : > { %3158 = vsyncadd (%p3958_p6), %s624_s24, 4294967280  ;;  %p3959_p11 = scmp.eq.s32.totalorder %s3329_s1, 0 }
  0x92   : > { %3160 = dma.done.wait (%p3959_p11), [#allocation6], 16   ;;  %p3960_p7 = pmov %p3959_p11 }
  0x94   : > { %3162 = vsyncadd (%p3960_p7), [#allocation6], 4294967280  ;;  %p3961_p12 = pmov %p3960_p7 }
  0x95   : > { %p3962_p10 = pmov %p3960_p7 }
  0x96   : > { %3164 = dma.done.wait (%p3961_p12), [#allocation9], 528  }
  0x97   : > { %3166 = vsyncadd (%p3962_p10), [#allocation9], 4294966768  ;;  %vm705_vm0 = vcmask 261120   ;;  %v701_v0 = vld [vmem:[%s618_s29] sm:$0xff]  ;;  %s3963_s4 = sld [smem:[#allocation30_spill]]  ;;  %v3198_v8 = vmov 0.0  }
  0x98   : > { %v706_v1 = vsel %vm705_vm0, %v701_v0, 0.0  ;;  %2665 = vmatprep.subr.mxu0 %v3198_v8  ;;  %vm3199_vm1 = vmmov 0   ;;  %2676 = vmatprep.subr.mxu1 %v3198_v8  ;;  %v2523_v16 = vld [vmem:[#allocation7] ss:$0 sm:$0xff]  ;;  %v2524_v18 = vld [vmem:[#allocation8] ss:$0 sm:$0xff] }
  0x99   : > { %707 = vadd.xlane.f32.xlu0 %v706_v1  ;;  %2673 = vmatprep.mubr.msk.f32.mxu0 %vm3199_vm1, %v3198_v8  ;;  %v2525_v21 = vld [vmem:[%s3896_s5] ss:$0 sm:$0xff]  ;;  %s3200_s29 = smov 64   ;;  %s3201_s16 = smov 96   ;;  %vm821_vm2 = vcmask 130048   ;;  %vm904_vm3 = vcmask 64512  }
  0x9a   : > { %2678 = vmatprep.mubr.msk.f32.mxu1 %vm3199_vm1, %v3198_v8  ;;  %v3546_v28 = vld [vmem:[%s626_s28] ss:$0 sm:$0xff]  ;;  %s3202_s24 = smov 80   ;;  %s3203_s28 = smov 112   ;;  %v1167_v59 = vld [vmem:[%s3897_s6 + $0x18] sm:$0xff]  ;;  %v1166_v60 = vld [vmem:[%s3897_s6 + $0x10] sm:$0xff] }
  0x9b   : > { %s3204_s2 = smov 48   ;;  %v1165_v61 = vld [vmem:[%s3897_s6 + $0x8] sm:$0xff]  ;;  %v1164_v62 = vld [vmem:[%s3897_s6] sm:$0xff]  ;;  %s3205_s23 = smov 16   ;;  %vm1386_vm4 = vcmask 523264  }
  0x9c   : > { %s3964_s15 = sld [smem:[#allocation31_spill]]  ;;  %s694_s26 = scalar_lea.vmem [#allocation11], %s2518_s20 }
  0x9d   : > { %v737_v7 = vld [vmem:[%s3963_s4 + $0x18] sm:$0xff]  ;;  %v736_v9 = vld [vmem:[%s3963_s4 + $0x10] sm:$0xff]  ;;  %v735_v10 = vld [vmem:[%s3963_s4 + $0x8] sm:$0xff]  ;;  %s3965_s22 = sld [smem:[#allocation25_spill]]  ;;  %s2592_s17 = sshll.u32 %s3329_s1, 7 }
  0x9e   : > { %2666 = vmatpush3.msra.mxu0 %v737_v7  ;;  %v734_v11 = vld [vmem:[%s3963_s4] sm:$0xff]  ;;  %s3966_s25 = sld [smem:[#allocation34_spill]] }
  0x9f   : > { %2667 = vmatprep.subr.mxu0 %v3198_v8 }
  0xa0   : > { %2668 = vmatpush3.msra.mxu0 %v736_v9 }
  0xa1   : > { %2669 = vmatprep.subr.mxu0 %v3198_v8 }
  0xa2   : > { %2670 = vmatpush3.msra.mxu0 %v735_v10 }
  0xa3   : > { %2671 = vmatprep.subr.mxu0 %v3198_v8  ;;  %p3967_p0 = scmp.ne.s32.totalorder %s3965_s22, 0 }
  0xa4   : > { %2672 = vmatpush3.msra.mxu0 %v734_v11 }
  0xa5   : > { %2696 = vmatprep.subr.mxu0 %v3198_v8 }
 0x122   : > { %v708_v2 = vpop.xlane.xlu0 %707 }
 0x123   : > { %v710_v3 = vmul.f32 0.03125, %v708_v2 }
 0x125   : > { %v711_v4 = vsub.f32 %v701_v0, %v710_v3  ;;  %v2534_v3 = vld [vmem:[%s3898_s7] ss:$0 sm:$0xff] }
 0x127   : > { %v712_v5 = vmul.f32 %v711_v4, %v711_v4 }
 0x129   : > { %v713_v6 = vsel %vm705_vm0, %v712_v5, 0.0 }
 0x12a   : > { %714 = vadd.xlane.f32.xlu0 %v713_v6 }
 0x1b3   : > { %v715_v12 = vpop.xlane.xlu0 %714 }
 0x1b4   : > { %v716_v13 = vmul.f32 0.03125, %v715_v12 }
 0x1b6   : > { %v717_v14 = vadd.f32 1e-12, %v716_v13 }
 0x1b8   : > { %2917 = vrsqrt.f32 %v717_v14 }
 0x1c5   : > { %v2918_v15 = vpop.eup %2917 }
 0x1c6   : > { %v719_v17 = vmul.f32 %v2918_v15, %v711_v4  ;;  %v1281_v15 = vld [vmem:[%s3901_s10 + $0x18] sm:$0xff] }
 0x1c8   : > { %v726_v19 = vmul.f32 %v2523_v16, %v719_v17  ;;  %v1280_v16 = vld [vmem:[%s3901_s10 + $0x10] sm:$0xff]  ;;  %v1279_v17 = vld [vmem:[%s3901_s10 + $0x8] sm:$0xff] }
 0x1ca   : > { %v3527_v20 = vadd.f32 %v2524_v18, %v726_v19  ;;  %v1278_v18 = vld [vmem:[%s3901_s10] sm:$0xff] }
 0x1cc   : > { %2674 = vmatmul.mubr.msk.f32.vlgmr.msra.gmra.mxu0 %vm705_vm0, %v3527_v20 }
 0x1cd   : > { %2704 = vmatprep.mubr.msk.f32.mxu0 %vm3199_vm1, %v3198_v8  ;;  %2697 = vmatpush3.msra.mxu0 %v1167_v59 }
 0x1ce   : > { %2698 = vmatprep.subr.mxu0 %v3198_v8 }
 0x1cf   : > { %2699 = vmatpush3.msra.mxu0 %v1166_v60 }
 0x1d0   : > { %2700 = vmatprep.subr.mxu0 %v3198_v8 }
 0x1d1   : > { %2701 = vmatpush3.msra.mxu0 %v1165_v61  ;;  %v2547_v61 = vld [vmem:[%s3963_s4 + $0x38] sm:$0xff] }
 0x1d2   : > { %2702 = vmatprep.subr.mxu0 %v3198_v8 }
 0x1d3   : > { %2703 = vmatpush3.msra.mxu0 %v1164_v62  ;;  %v2546_v62 = vld [vmem:[%s3963_s4 + $0x30] sm:$0xff] }
 0x1d4   : > { %2718 = vmatprep.subr.mxu0 %v3198_v8 }
 0x28c   : > { %v814_v22 = vpop.f32.mrf.mxu0 }
 0x28d   : > { %v815_v23 = vadd.f32 %v2525_v21, %v814_v22 }
 0x28e   : > { %v2675_v24 = vpop.f32.mrf.mxu0 }
 0x28f   : > { %916 = vrot.lane.b32.xlu0 %v815_v23, %s3200_s29  ;;  %819 = vrot.lane.b32.xlu1 %v815_v23, %s3201_s16 }
 0x301   : > { %v820_v25 = vpop.permute.xlu1 %819  ;;  %v917_v26 = vpop.permute.xlu0 %916 }
 0x302   : > { %2677 = vmatpush3.xpose.msk.msra.mxu1 %vm821_vm2, %v820_v25  ;;  %v2537_v25 = vld [vmem:[%s3900_s9] ss:$0 sm:$0xff] }
 0x303   : > { %2681 = vmatprep.subr.mxu1 %v3198_v8 }
 0x305   : > { %2679 = vmatmul.mubr.msk.f32.vlgmr.msra.gmra.mxu1 %vm821_vm2, %v815_v23 }
 0x306   : > { %2682 = vmatpush3.msra.mxu1 %v917_v26  ;;  %2683 = vmatprep.mubr.msk.f32.mxu1 %vm3199_vm1, %v3198_v8 }
 0x307   : > { %2686 = vmatprep.subr.mxu1 %v3198_v8 }
 0x3c5   : > { %v892_v27 = vpop.f32.mrf.mxu1 }
 0x3c6   : > { %v896_v29 = vmul.f32 0.25, %v892_v27 }
 0x3c7   : > { %v2680_v30 = vpop.f32.mrf.mxu1 }
 0x3c8   : > { %v903_v31 = vadd.f32 %v3546_v28, %v896_v29  ;;  %v1378_v29 = vld [vmem:[%s3903_s12 + $0x38] sm:$0xff]  ;;  %v1377_v30 = vld [vmem:[%s3903_s12 + $0x30] sm:$0xff] }
 0x3ca   : > { %v905_v32 = vsel %vm904_vm3, %v903_v31, -inf }
 0x3cb   : > { %906 = vmax.xlane.f32.xlu1 %v905_v32  ;;  %v1375_v32 = vld [vmem:[%s3903_s12 + $0x20] sm:$0xff] }
 0x454   : > { %v907_v33 = vpop.xlane.xlu1 %906 }
 0x455   : > { %v908_v34 = vsub.f32 %v903_v31, %v907_v33  ;;  %v1376_v31 = vld [vmem:[%s3903_s12 + $0x28] sm:$0xff]  ;;  %v1374_v33 = vld [vmem:[%s3903_s12 + $0x18] sm:$0xff] }
 0x457   : > { %v909_v35 = vmul.f32 1.442695, %v908_v34  ;;  %v1373_v34 = vld [vmem:[%s3903_s12 + $0x10] sm:$0xff] }
 0x459   : > { %2919 = vpow2.f32 %v909_v35  ;;  %v1372_v35 = vld [vmem:[%s3903_s12 + $0x8] sm:$0xff] }
 0x466   : > { %v2920_v36 = vpop.eup %2919 }
 0x467   : > { %v911_v37 = vsel %vm904_vm3, %v2920_v36, 0.0 }
 0x468   : > { %912 = vadd.xlane.f32.xlu0 %v911_v37  ;;  %v2538_v37 = vld [vmem:[%s3902_s11] ss:$0 sm:$0xff] }
 0x47e   : > { %994 = vrot.lane.b32.xlu0 %v815_v23, %s3202_s24 }
 0x482   : > { %992 = vrot.lane.b32.xlu0 %v815_v23, %s3203_s28 }
 0x4f1   : > { %v913_v38 = vpop.xlane.xlu0 %912 }
 0x4f2   : > { %2921 = vrcp.f32 %v913_v38 }
 0x4f5   : > { %v995_v40 = vpop.permute.xlu0 %994 }
 0x4f9   : > { %v993_v42 = vpop.permute.xlu0 %992 }
 0x4ff   : > { %v2922_v39 = vpop.eup %2921 }
 0x500   : > { %v915_v41 = vmul.f32 %v2922_v39, %v2920_v36  ;;  %v1371_v36 = vld [vmem:[%s3903_s12] sm:$0xff] }
 0x502   : > { %2684 = vmatmul.mubr.msk.f32.vlgmr.msra.gmra.mxu1 %vm904_vm3, %v915_v41 }
 0x503   : > { %2687 = vmatpush3.xpose.msk.msra.mxu1 %vm821_vm2, %v995_v40  ;;  %2688 = vmatprep.mubr.msk.f32.mxu1 %vm3199_vm1, %v3198_v8 }
 0x504   : > { %2691 = vmatprep.subr.mxu1 %v3198_v8 }
 0x506   : > { %2689 = vmatmul.mubr.msk.f32.vlgmr.msra.gmra.mxu1 %vm821_vm2, %v993_v42 }
 0x507   : > { %2693 = vmatprep.mubr.msk.f32.mxu1 %vm3199_vm1, %v3198_v8 }
 0x5c2   : > { %v988_v43 = vpop.f32.mrf.mxu1 }
 0x5c4   : > { %v2685_v44 = vpop.f32.mrf.mxu1 }
 0x5c6   : > { %v1066_v45 = vpop.f32.mrf.mxu1 }
 0x5c7   : > { %v1070_v46 = vmul.f32 0.25, %v1066_v45 }
 0x5c8   : > { %v2690_v47 = vpop.f32.mrf.mxu1 }
 0x5c9   : > { %v1071_v48 = vadd.f32 %v3546_v28, %v1070_v46 }
 0x5cb   : > { %v1072_v49 = vsel %vm904_vm3, %v1071_v48, -inf }
 0x5cc   : > { %1073 = vmax.xlane.f32.xlu1 %v1072_v49 }
 0x5dd   : > { %1083 = vrot.lane.b32.xlu1 %v815_v23, %s3204_s2  ;;  %v2536_v23 = vld [vmem:[%s3899_s8] ss:$0 sm:$0xff] }
 0x655   : > { %v1074_v50 = vpop.xlane.xlu1 %1073 }
 0x656   : > { %v1075_v51 = vsub.f32 %v1071_v48, %v1074_v50  ;;  %v2540_v50 = vld [vmem:[%s3904_s13] ss:$0 sm:$0xff] }
 0x658   : > { %v1076_v52 = vmul.f32 1.442695, %v1075_v51 }
 0x659   : > { %v1084_v53 = vpop.permute.xlu1 %1083 }
 0x65a   : > { %2923 = vpow2.f32 %v1076_v52  ;;  %2692 = vmatpush3.msra.mxu1 %v1084_v53 }
 0x65b   : > { %2707 = vmatprep.subr.mxu1 %v3198_v8 }
 0x667   : > { %v2924_v54 = vpop.eup %2923 }
 0x668   : > { %v1078_v55 = vsel %vm904_vm3, %v2924_v54, 0.0 }
 0x669   : > { %1079 = vadd.xlane.f32.xlu0 %v1078_v55 }
 0x6f2   : > { %v1080_v56 = vpop.xlane.xlu0 %1079 }
 0x6f3   : > { %2925 = vrcp.f32 %v1080_v56 }
 0x700   : > { %v2926_v57 = vpop.eup %2925 }
 0x701   : > { %v1082_v58 = vmul.f32 %v2926_v57, %v2924_v54 }
 0x703   : > { %2694 = vmatmul.mubr.msk.f32.vlgmr.msra.gmra.mxu1 %vm904_vm3, %v1082_v58 }
 0x704   : > { %2715 = vmatprep.mubr.msk.f32.mxu1 %vm3199_vm1, %v3198_v8  ;;  %2708 = vmatpush3.msra.mxu1 %v1281_v15 }
 0x705   : > { %2709 = vmatprep.subr.mxu1 %v3198_v8 }
 0x706   : > { %2710 = vmatpush3.msra.mxu1 %v1280_v16 }
 0x707   : > { %2711 = vmatprep.subr.mxu1 %v3198_v8 }
 0x708   : > { %2712 = vmatpush3.msra.mxu1 %v1279_v17 }
 0x709   : > { %2713 = vmatprep.subr.mxu1 %v3198_v8 }
 0x70a   : > { %2714 = vmatpush3.msra.mxu1 %v1278_v18 }
 0x70b   : > { %2737 = vmatprep.subr.mxu1 %v3198_v8 }
 0x7c3   : > { %v1155_v63 = vpop.f32.mrf.mxu1 }
 0x7c4   : > { %1160 = vrot.lane.b32.xlu1 %v1155_v63, %s3205_s23  ;;  %v2545_v63 = vld [vmem:[%s3963_s4 + $0x28] sm:$0xff] }
 0x7c5   : > { %v2695_v0 = vpop.f32.mrf.mxu1 }
 0x7c6   : > { %v2544_v0 = vld [vmem:[%s3963_s4 + $0x20] sm:$0xff] }
 0x836   : > { %v1161_v1 = vpop.permute.xlu1 %1160 }
 0x837   : > { %v1163_v2 = vsel %vm821_vm2, %v988_v43, %v1161_v1 }
 0x838   : > { %2705 = vmatmul.mubr.msk.f32.vlgmr.msra.gmra.mxu0 %vm705_vm0, %v1163_v2 }
 0x839   : > { %2734 = vmatprep.mubr.msk.f32.mxu0 %vm3199_vm1, %v3198_v8  ;;  %2719 = vmatpush3.msra.mxu0 %v1378_v29 }
 0x83a   : > { %2720 = vmatprep.subr.mxu0 %v3198_v8 }
 0x83b   : > { %2721 = vmatpush3.msra.mxu0 %v1377_v30 }
 0x83c   : > { %2722 = vmatprep.subr.mxu0 %v3198_v8 }
 0x83d   : > { %2723 = vmatpush3.msra.mxu0 %v1376_v31 }
 0x83e   : > { %2724 = vmatprep.subr.mxu0 %v3198_v8 }
 0x83f   : > { %2725 = vmatpush3.msra.mxu0 %v1375_v32 }
 0x840   : > { %2726 = vmatprep.subr.mxu0 %v3198_v8 }
 0x841   : > { %2727 = vmatpush3.msra.mxu0 %v1374_v33 }
 0x842   : > { %2728 = vmatprep.subr.mxu0 %v3198_v8 }
 0x843   : > { %2729 = vmatpush3.msra.mxu0 %v1373_v34 }
 0x844   : > { %2730 = vmatprep.subr.mxu0 %v3198_v8 }
 0x845   : > { %2731 = vmatpush3.msra.mxu0 %v1372_v35 }
 0x846   : > { %2732 = vmatprep.subr.mxu0 %v3198_v8 }
 0x847   : > { %2733 = vmatpush3.msra.mxu0 %v1371_v36 }
 0x848   : > { %2758 = vmatprep.subr.mxu0 %v3198_v8 }
 0x8f8   : > { %v1244_v4 = vpop.f32.mrf.mxu0 }
 0x8f9   : > { %v1245_v5 = vadd.f32 %v2534_v3, %v1244_v4 }
 0x8fa   : > { %v2706_v6 = vpop.f32.mrf.mxu0 }
 0x8fb   : > { %v1248_v7 = vadd.f32 %v1245_v5, %v3527_v20  ;;  %v2542_v5 = vld [vmem:[%s3905_s14] ss:$0 sm:$0xff] }
 0x8fd   : > { %v1251_v9 = vsel %vm705_vm0, %v1248_v7, 0.0 }
 0x8fe   : > { %1252 = vadd.xlane.f32.xlu1 %v1251_v9 }
 0x987   : > { %v1253_v10 = vpop.xlane.xlu1 %1252 }
 0x988   : > { %v1254_v11 = vmul.f32 0.03125, %v1253_v10 }
 0x98a   : > { %v1255_v12 = vsub.f32 %v1248_v7, %v1254_v11  ;;  %v2543_v7 = vld [vmem:[%s3964_s15] ss:$0 sm:$0xff]  ;;  %v2549_v11 = vld [vmem:[%s3896_s5 + $0x1] ss:$0 sm:$0xff] }
 0x98c   : > { %v1256_v13 = vmul.f32 %v1255_v12, %v1255_v12 }
 0x98e   : > { %v1257_v14 = vsel %vm705_vm0, %v1256_v13, 0.0 }
 0x98f   : > { %1258 = vadd.xlane.f32.xlu0 %v1257_v14 }
 0xa18   : > { %v1259_v19 = vpop.xlane.xlu0 %1258 }
 0xa19   : > { %v1260_v20 = vmul.f32 0.03125, %v1259_v19 }
 0xa1b   : > { %v1261_v21 = vadd.f32 1e-12, %v1260_v20 }
 0xa1d   : > { %2927 = vrsqrt.f32 %v1261_v21 }
 0xa2a   : > { %v2928_v22 = vpop.eup %2927 }
 0xa2b   : > { %v1263_v24 = vmul.f32 %v2928_v22, %v1255_v12 }
 0xa2d   : > { %v1270_v26 = vmul.f32 %v2536_v23, %v1263_v24 }
 0xa2f   : > { %v1277_v27 = vadd.f32 %v2537_v25, %v1270_v26 }
 0xa31   : > { %2716 = vmatmul.mubr.msk.f32.vlgmr.msra.gmra.mxu1 %vm705_vm0, %v1277_v27 }
 0xa32   : > { %2745 = vmatprep.mubr.msk.f32.mxu1 %vm3199_vm1, %v3198_v8  ;;  %2738 = vmatpush3.msra.mxu1 %v2547_v61 }
 0xa33   : > { %2739 = vmatprep.subr.mxu1 %v3198_v8 }
 0xa34   : > { %2740 = vmatpush3.msra.mxu1 %v2546_v62 }
 0xa35   : > { %2741 = vmatprep.subr.mxu1 %v3198_v8 }
 0xa36   : > { %2742 = vmatpush3.msra.mxu1 %v2545_v63 }
 0xa37   : > { %2743 = vmatprep.subr.mxu1 %v3198_v8 }
 0xa38   : > { %2744 = vmatpush3.msra.mxu1 %v2544_v0 }
 0xa39   : > { %2748 = vmatprep.subr.mxu1 %v3198_v8 }
 0xaf1   : > { %v1358_v38 = vpop.f32.mrf.mxu1 }
 0xaf2   : > { %v1359_v39 = vadd.f32 %v2538_v37, %v1358_v38 }
 0xaf3   : > { %v2717_v40 = vpop.f32.mrf.mxu1 }
 0xaf4   : > { %v1363_v41 = vmul.f32 0.044715, %v1359_v39  ;;  %v1362_v47 = vmul.f32 0.5, %v1359_v39 }
 0xaf6   : > { %v1364_v42 = vmul.f32 %v1363_v41, %v1359_v39 }
 0xaf8   : > { %v1365_v43 = vmul.f32 %v1364_v42, %v1359_v39 }
 0xafa   : > { %v1366_v44 = vadd.f32 %v1365_v43, %v1359_v39 }
 0xafc   : > { %v1367_v45 = vmul.f32 0.7978846, %v1366_v44 }
 0xafe   : > { %2929 = vtanh.f32 %v1367_v45 }
 0xb0b   : > { %v2930_v46 = vpop.eup %2929 }
 0xb0c   : > { %v1369_v48 = vadd.f32 1.0, %v2930_v46  ;;  %v2560_v46 = vld [vmem:[%s3897_s6 + $0x38] sm:$0xff] }
 0xb0e   : > { %v1370_v49 = vmul.f32 %v1369_v48, %v1362_v47  ;;  %v2559_v47 = vld [vmem:[%s3897_s6 + $0x30] sm:$0xff]  ;;  %v2558_v48 = vld [vmem:[%s3897_s6 + $0x28] sm:$0xff] }
 0xb10   : > { %2735 = vmatmul.mubr.msk.f32.vlgmr.msra.gmra.mxu0 %vm1386_vm4, %v1370_v49  ;;  %v2557_v49 = vld [vmem:[%s3897_s6 + $0x20] sm:$0xff] }
 0xb11   : > { %2760 = vmatprep.mubr.msk.f32.mxu0 %vm3199_vm1, %v3198_v8 }
 0xbd0   : > { %v1456_v51 = vpop.f32.mrf.mxu0 }
 0xbd1   : > { %v1457_v52 = vadd.f32 %v2540_v50, %v1456_v51 }
 0xbd2   : > { %v2736_v53 = vpop.f32.mrf.mxu0 }
 0xbd3   : > { %v1460_v54 = vadd.f32 %v1457_v52, %v1277_v27 }
 0xbd5   : > { %v1463_v55 = vsel %vm705_vm0, %v1460_v54, 0.0 }
 0xbd6   : > { %1464 = vadd.xlane.f32.xlu0 %v1463_v55 }
 0xc5f   : > { %v1465_v56 = vpop.xlane.xlu0 %1464 }
 0xc60   : > { %v1466_v57 = vmul.f32 0.03125, %v1465_v56  ;;  %v2562_v56 = vld [vmem:[%s3898_s7 + $0x1] ss:$0 sm:$0xff] }
 0xc62   : > { %v1467_v58 = vsub.f32 %v1460_v54, %v1466_v57 }
 0xc64   : > { %v1468_v59 = vmul.f32 %v1467_v58, %v1467_v58 }
 0xc66   : > { %v1469_v60 = vsel %vm705_vm0, %v1468_v59, 0.0 }
 0xc67   : > { %1470 = vadd.xlane.f32.xlu0 %v1469_v60 }
 0xcf0   : > { %v1471_v1 = vpop.xlane.xlu0 %1470 }
 0xcf1   : > { %v1472_v2 = vmul.f32 0.03125, %v1471_v1 }
 0xcf3   : > { %v1473_v3 = vadd.f32 1e-12, %v1472_v2 }
 0xcf5   : > { %2931 = vrsqrt.f32 %v1473_v3  ;;  %v2571_v3 = vld [vmem:[%s3901_s10 + $0x38] sm:$0xff] }
 0xd02   : > { %v2932_v4 = vpop.eup %2931 }
 0xd03   : > { %v1475_v6 = vmul.f32 %v2932_v4, %v1467_v58  ;;  %v2570_v4 = vld [vmem:[%s3901_s10 + $0x30] sm:$0xff] }
 0xd05   : > { %v1482_v9 = vmul.f32 %v2542_v5, %v1475_v6  ;;  %v2569_v5 = vld [vmem:[%s3901_s10 + $0x28] sm:$0xff]  ;;  %v2568_v6 = vld [vmem:[%s3901_s10 + $0x20] sm:$0xff] }
 0xd07   : > { %v3686_v10 = vadd.f32 %v2543_v7, %v1482_v9 }
 0xd09   : > { %2746 = vmatmul.mubr.msk.f32.vlgmr.msra.gmra.mxu1 %vm705_vm0, %v3686_v10 }
 0xd0a   : > { %2750 = vmatprep.mubr.msk.f32.mxu1 %vm3199_vm1, %v3198_v8 }
 0xdc9   : > { %v1572_v12 = vpop.f32.mrf.mxu1 }
 0xdca   : > { %v1573_v13 = vadd.f32 %v2549_v11, %v1572_v12  ;;  %v2566_v12 = vld [vmem:[%s3899_s8 + $0x1] ss:$0 sm:$0xff] }
 0xdcb   : > { %v2747_v14 = vpop.f32.mrf.mxu1 }
 0xdcc   : > { %1744 = vrot.lane.b32.xlu1 %v1573_v13, %s3202_s24  ;;  %1577 = vrot.lane.b32.xlu0 %v1573_v13, %s3201_s16  ;;  %v2567_v14 = vld [vmem:[%s3900_s9 + $0x1] ss:$0 sm:$0xff]  ;;  %s2349_s16 = sshll.u32 %s694_s26, 4  ;;  %s2332_s24 = scalar_lea.sflag [#allocation4], %s3479_s19  ;;  %s2350_s16 = int_to_ptr.vmem [resolvable:$true] %s2349_s16 }
 0xdd0   : > { %1742 = vrot.lane.b32.xlu0 %v1573_v13, %s3203_s28  ;;  %s3083_s28 = scalar_lea.vmem %s2350_s16, 128 }
 0xdd1   : > { %p3084_p13 = scmp.ne.s32.totalorder %s2350_s16, %s3083_s28 }
 0xdd3   : > { %p3085_p5 = pnand %p3084_p13, %p3967_p0 }
 0xdd5   : > { %p3086_p9 = pneg %p3085_p5 }
 0xe3e   : > { %v1745_v15 = vpop.permute.xlu1 %1744  ;;  %v1578_v16 = vpop.permute.xlu0 %1577 }
 0xe3f   : > { %2749 = vmatpush3.xpose.msk.msra.mxu1 %vm821_vm2, %v1578_v16  ;;  %2759 = vmatpush3.xpose.msk.msra.mxu0 %vm821_vm2, %v1745_v15 }
 0xe40   : > { %2753 = vmatprep.subr.mxu1 %v3198_v8  ;;  %2768 = vmatprep.subr.mxu0 %v3198_v8 }
 0xe42   : > { %2751 = vmatmul.mubr.msk.f32.vlgmr.msra.gmra.mxu1 %vm821_vm2, %v1573_v13  ;;  %v1743_v17 = vpop.permute.xlu0 %1742 }
 0xe43   : > { %2761 = vmatmul.mubr.msk.f32.vlgmr.msra.gmra.mxu0 %vm821_vm2, %v1743_v17  ;;  %2755 = vmatprep.mubr.msk.f32.mxu1 %vm3199_vm1, %v3198_v8  ;;  %v2582_v17 = vld [vmem:[%s3903_s12 + $0x78] sm:$0xff] }
 0xe44   : > { %2776 = vmatprep.mubr.msk.f32.mxu0 %vm3199_vm1, %v3198_v8  ;;  %2769 = vmatpush3.msra.mxu0 %v2560_v46 }
 0xe45   : > { %2770 = vmatprep.subr.mxu0 %v3198_v8 }
 0xe46   : > { %2771 = vmatpush3.msra.mxu0 %v2559_v47 }
 0xe47   : > { %2772 = vmatprep.subr.mxu0 %v3198_v8 }
 0xe48   : > { %2773 = vmatpush3.msra.mxu0 %v2558_v48 }
 0xe49   : > { %2774 = vmatprep.subr.mxu0 %v3198_v8 }
 0xe4a   : > { %2775 = vmatpush3.msra.mxu0 %v2557_v49  ;;  %v2253_v49 = vld [vmem:[#allocation10 + $0x18] sm:$0xff] }
 0xe4b   : > { %2790 = vmatprep.subr.mxu0 %v3198_v8 }
 0xf02   : > { %v1649_v18 = vpop.f32.mrf.mxu1 }
 0xf03   : > { %v1653_v19 = vmul.f32 0.25, %v1649_v18  ;;  %v1816_v20 = vpop.f32.mrf.mxu0  ;;  %v2581_v18 = vld [vmem:[%s3903_s12 + $0x70] sm:$0xff] }
 0xf04   : > { %v1820_v21 = vmul.f32 0.25, %v1816_v20  ;;  %v2752_v22 = vpop.f32.mrf.mxu1  ;;  %v2579_v20 = vld [vmem:[%s3903_s12 + $0x60] sm:$0xff] }
 0xf05   : > { %v2762_v23 = vpop.f32.mrf.mxu0  ;;  %v1654_v24 = vadd.f32 %v3546_v28, %v1653_v19  ;;  %v2580_v19 = vld [vmem:[%s3903_s12 + $0x68] sm:$0xff]  ;;  %v2577_v22 = vld [vmem:[%s3903_s12 + $0x50] sm:$0xff] }
 0xf06   : > { %v1821_v25 = vadd.f32 %v3546_v28, %v1820_v21  ;;  %v2578_v21 = vld [vmem:[%s3903_s12 + $0x58] sm:$0xff]  ;;  %v2576_v23 = vld [vmem:[%s3903_s12 + $0x48] sm:$0xff] }
 0xf07   : > { %v1655_v26 = vsel %vm904_vm3, %v1654_v24, -inf }
 0xf08   : > { %1656 = vmax.xlane.f32.xlu0 %v1655_v26  ;;  %v1822_v27 = vsel %vm904_vm3, %v1821_v25, -inf }
 0xf09   : > { %1823 = vmax.xlane.f32.xlu1 %v1822_v27 }
 0xf1a   : > { %1833 = vrot.lane.b32.xlu1 %v1573_v13, %s3204_s2  ;;  %s3206_s2 = smov [#allocation11]  }
 0xf1b   : > { %s3087_s3 = sshll.u32 %s3206_s2, 4  ;;  %s3088_s3 = int_to_ptr.vmem [resolvable:$false] %s3087_s3 }
 0xf1c   : > { %s3089_s0 = scalar_lea.vmem %s3088_s3, 256  ;;  %p3090_p2 = scmp.lt.s32.totalorder %s2350_s16, %s3088_s3 }
 0xf1d   : > { %p3091_p4 = scmp.lt.s32.totalorder %s3089_s0, %s3083_s28 }
 0xf1f   : > { %p3092_p8 = por %p3091_p4, %p3090_p2 }
 0xf21   : > { %p3093_p1 = pnand %p3092_p8, %p3086_p9 }
 0xf91   : > { %v1657_v29 = vpop.xlane.xlu0 %1656 }
 0xf92   : > { %v1658_v30 = vsub.f32 %v1654_v24, %v1657_v29  ;;  %v1824_v31 = vpop.xlane.xlu1 %1823  ;;  %v2575_v24 = vld [vmem:[%s3903_s12 + $0x40] sm:$0xff] }
 0xf93   : > { %v1825_v32 = vsub.f32 %v1821_v25, %v1824_v31  ;;  %v2573_v25 = vld [vmem:[%s3902_s11 + $0x1] ss:$0 sm:$0xff] }
 0xf94   : > { %v1659_v33 = vmul.f32 1.442695, %v1658_v30 }
 0xf95   : > { %v1826_v34 = vmul.f32 1.442695, %v1825_v32 }
 0xf96   : > { %2933 = vpow2.f32 %v1659_v33  ;;  %v1834_v43 = vpop.permute.xlu1 %1833 }
 0xf97   : > { %2935 = vpow2.f32 %v1826_v34 }
 0xfa3   : > { %v2934_v35 = vpop.eup %2933 }
 0xfa4   : > { %v1661_v36 = vsel %vm904_vm3, %v2934_v35, 0.0  ;;  %v2936_v28 = vpop.eup %2935 }
 0xfa5   : > { %1662 = vadd.xlane.f32.xlu0 %v1661_v36  ;;  %v1828_v37 = vsel %vm904_vm3, %v2936_v28, 0.0 }
 0xfa9   : > { %1829 = vadd.xlane.f32.xlu0 %v1828_v37 }
 0xfbf   : > { %1666 = vrot.lane.b32.xlu0 %v1573_v13, %s3200_s29  ;;  %s2347_s29 = scalar_lea.hbm %s3966_s25, %s2592_s17 }
0x102e   : > { %v1663_v38 = vpop.xlane.xlu0 %1662 }
0x102f   : > { %2937 = vrcp.f32 %v1663_v38  ;;  %v2584_v38 = vld [vmem:[%s3904_s13 + $0x1] ss:$0 sm:$0xff] }
0x1032   : > { %v1830_v39 = vpop.xlane.xlu0 %1829 }
0x1033   : > { %2939 = vrcp.f32 %v1830_v39 }
0x1036   : > { %v1667_v40 = vpop.permute.xlu0 %1666 }
0x1037   : > { %2754 = vmatpush3.msra.mxu1 %v1667_v40 }
0x1038   : > { %2763 = vmatprep.subr.mxu1 %v3198_v8 }
0x103c   : > { %v2938_v41 = vpop.eup %2937 }
0x103d   : > { %v1665_v42 = vmul.f32 %v2938_v41, %v2934_v35 }
0x103f   : > { %2756 = vmatmul.mubr.msk.f32.vlgmr.msra.gmra.mxu1 %vm904_vm3, %v1665_v42 }
0x1040   : > { %v2940_v44 = vpop.eup %2939  ;;  %2764 = vmatpush3.msra.mxu1 %v1834_v43  ;;  %2765 = vmatprep.mubr.msk.f32.mxu1 %vm3199_vm1, %v3198_v8 }
0x1041   : > { %v1832_v45 = vmul.f32 %v2940_v44, %v2936_v28  ;;  %2779 = vmatprep.subr.mxu1 %v3198_v8 }
0x1043   : > { %2766 = vmatmul.mubr.msk.f32.vlgmr.msra.gmra.mxu1 %vm904_vm3, %v1832_v45 }
0x1044   : > { %2787 = vmatprep.mubr.msk.f32.mxu1 %vm3199_vm1, %v3198_v8  ;;  %2780 = vmatpush3.msra.mxu1 %v2571_v3 }
0x1045   : > { %2781 = vmatprep.subr.mxu1 %v3198_v8 }
0x1046   : > { %2782 = vmatpush3.msra.mxu1 %v2570_v4 }
0x1047   : > { %2783 = vmatprep.subr.mxu1 %v3198_v8 }
0x1048   : > { %2784 = vmatpush3.msra.mxu1 %v2569_v5 }
0x1049   : > { %2785 = vmatprep.subr.mxu1 %v3198_v8 }
0x104a   : > { %2786 = vmatpush3.msra.mxu1 %v2568_v6 }
0x104b   : > { %2809 = vmatprep.subr.mxu1 %v3198_v8 }
0x10ff   : > { %v1738_v50 = vpop.f32.mrf.mxu1 }
0x1101   : > { %v2757_v51 = vpop.f32.mrf.mxu1 }
0x1102   : > { %v2251_v51 = vld [vmem:[#allocation10 + $0x8] sm:$0xff] }
0x1103   : > { %v1905_v52 = vpop.f32.mrf.mxu1 }
0x1104   : > { %1910 = vrot.lane.b32.xlu1 %v1905_v52, %s3205_s23  ;;  %v2250_v52 = vld [vmem:[#allocation10] sm:$0xff] }
0x1105   : > { %v2767_v53 = vpop.f32.mrf.mxu1 }
0x1176   : > { %v1911_v54 = vpop.permute.xlu1 %1910 }
0x1177   : > { %v1913_v55 = vsel %vm821_vm2, %v1738_v50, %v1911_v54  ;;  %v2252_v50 = vld [vmem:[#allocation10 + $0x10] sm:$0xff] }
0x1178   : > { %2777 = vmatmul.mubr.msk.f32.vlgmr.msra.gmra.mxu0 %vm705_vm0, %v1913_v55 }
0x1179   : > { %2806 = vmatprep.mubr.msk.f32.mxu0 %vm3199_vm1, %v3198_v8  ;;  %2791 = vmatpush3.msra.mxu0 %v2582_v17 }
0x117a   : > { %2792 = vmatprep.subr.mxu0 %v3198_v8 }
0x117b   : > { %2793 = vmatpush3.msra.mxu0 %v2581_v18 }
0x117c   : > { %2794 = vmatprep.subr.mxu0 %v3198_v8 }
0x117d   : > { %2795 = vmatpush3.msra.mxu0 %v2580_v19 }
0x117e   : > { %2796 = vmatprep.subr.mxu0 %v3198_v8 }
0x117f   : > { %2797 = vmatpush3.msra.mxu0 %v2579_v20 }
0x1180   : > { %2798 = vmatprep.subr.mxu0 %v3198_v8 }
0x1181   : > { %2799 = vmatpush3.msra.mxu0 %v2578_v21 }
0x1182   : > { %2800 = vmatprep.subr.mxu0 %v3198_v8 }
0x1183   : > { %2801 = vmatpush3.msra.mxu0 %v2577_v22 }
0x1184   : > { %2802 = vmatprep.subr.mxu0 %v3198_v8 }
0x1185   : > { %2803 = vmatpush3.msra.mxu0 %v2576_v23 }
0x1186   : > { %2804 = vmatprep.subr.mxu0 %v3198_v8 }
0x1187   : > { %2805 = vmatpush3.msra.mxu0 %v2575_v24 }
0x1238   : > { %v1996_v57 = vpop.f32.mrf.mxu0 }
0x1239   : > { %v1997_v58 = vadd.f32 %v2562_v56, %v1996_v57  ;;  %v2588_v57 = vld [vmem:[%s3905_s14 + $0x1] ss:$0 sm:$0xff] }
0x123a   : > { %v2778_v59 = vpop.f32.mrf.mxu0 }
0x123b   : > { %v2000_v60 = vadd.f32 %v1997_v58, %v3686_v10  ;;  %v2589_v59 = vld [vmem:[%s3964_s15 + $0x1] ss:$0 sm:$0xff] }
0x123d   : > { %v2005_v61 = vsel %vm705_vm0, %v2000_v60, 0.0 }
0x123e   : > { %2006 = vadd.xlane.f32.xlu0 %v2005_v61 }
0x12c7   : > { %v2007_v62 = vpop.xlane.xlu0 %2006 }
0x12c8   : > { %v2008_v63 = vmul.f32 0.03125, %v2007_v62 }
0x12ca   : > { %v2009_v0 = vsub.f32 %v2000_v60, %v2008_v63 }
0x12cc   : > { %v2010_v1 = vmul.f32 %v2009_v0, %v2009_v0 }
0x12ce   : > { %v2011_v2 = vsel %vm705_vm0, %v2010_v1, 0.0 }
0x12cf   : > { %2012 = vadd.xlane.f32.xlu1 %v2011_v2 }
0x1358   : > { %v2013_v7 = vpop.xlane.xlu1 %2012 }
0x1359   : > { %v2014_v9 = vmul.f32 0.03125, %v2013_v7 }
0x135b   : > { %v2015_v10 = vadd.f32 1e-12, %v2014_v9 }
0x135d   : > { %2941 = vrsqrt.f32 %v2015_v10 }
0x136a   : > { %v2942_v11 = vpop.eup %2941 }
0x136b   : > { %v2017_v13 = vmul.f32 %v2942_v11, %v2009_v0 }
0x136d   : > { %v2024_v15 = vmul.f32 %v2566_v12, %v2017_v13 }
0x136f   : > { %v2031_v16 = vadd.f32 %v2567_v14, %v2024_v15 }
0x1371   : > { %2788 = vmatmul.mubr.msk.f32.vlgmr.msra.gmra.mxu1 %vm705_vm0, %v2031_v16 }
0x1372   : > { %2817 = vmatprep.mubr.msk.f32.mxu1 %vm3199_vm1, %v3198_v8  ;;  %2810 = vmatpush3.msra.mxu1 %v2253_v49 }
0x1373   : > { %2811 = vmatprep.subr.mxu1 %v3198_v8 }
0x1374   : > { %2812 = vmatpush3.msra.mxu1 %v2252_v50 }
0x1375   : > { %2813 = vmatprep.subr.mxu1 %v3198_v8 }
0x1376   : > { %2814 = vmatpush3.msra.mxu1 %v2251_v51 }
0x1377   : > { %2815 = vmatprep.subr.mxu1 %v3198_v8 }
0x1378   : > { %2816 = vmatpush3.msra.mxu1 %v2250_v52 }
0x1431   : > { %v2114_v26 = vpop.f32.mrf.mxu1 }
0x1432   : > { %v2115_v27 = vadd.f32 %v2573_v25, %v2114_v26 }
0x1433   : > { %v2789_v29 = vpop.f32.mrf.mxu1 }
0x1434   : > { %v2119_v30 = vmul.f32 0.044715, %v2115_v27  ;;  %v2118_v36 = vmul.f32 0.5, %v2115_v27 }
0x1436   : > { %v2120_v31 = vmul.f32 %v2119_v30, %v2115_v27 }
0x1438   : > { %v2121_v32 = vmul.f32 %v2120_v31, %v2115_v27 }
0x143a   : > { %v2122_v33 = vadd.f32 %v2121_v32, %v2115_v27 }
0x143c   : > { %v2123_v34 = vmul.f32 0.7978846, %v2122_v33 }
0x143e   : > { %2943 = vtanh.f32 %v2123_v34 }
0x144b   : > { %v2944_v35 = vpop.eup %2943 }
0x144c   : > { %v2125_v28 = vadd.f32 1.0, %v2944_v35 }
0x144e   : > { %v2126_v37 = vmul.f32 %v2125_v28, %v2118_v36 }
0x1450   : > { %2807 = vmatmul.mubr.msk.f32.vlgmr.msra.gmra.mxu0 %vm1386_vm4, %v2126_v37 }
0x1510   : > { %v2213_v39 = vpop.f32.mrf.mxu0 }
0x1511   : > { %v2214_v40 = vadd.f32 %v2584_v38, %v2213_v39 }
0x1512   : > { %v2808_v41 = vpop.f32.mrf.mxu0 }
0x1513   : > { %v2217_v42 = vadd.f32 %v2214_v40, %v2031_v16 }
0x1515   : > { %v2222_v43 = vsel %vm705_vm0, %v2217_v42, 0.0 }
0x1516   : > { %2223 = vadd.xlane.f32.xlu0 %v2222_v43 }
0x159f   : > { %v2224_v44 = vpop.xlane.xlu0 %2223 }
0x15a0   : > { %v2225_v45 = vmul.f32 0.03125, %v2224_v44 }
0x15a2   : > { %v2226_v46 = vsub.f32 %v2217_v42, %v2225_v45 }
0x15a4   : > { %v2227_v47 = vmul.f32 %v2226_v46, %v2226_v46 }
0x15a6   : > { %v2228_v48 = vsel %vm705_vm0, %v2227_v47, 0.0 }
0x15a7   : > { %2229 = vadd.xlane.f32.xlu0 %v2228_v48 }
0x1630   : > { %v2230_v53 = vpop.xlane.xlu0 %2229 }
0x1631   : > { %v2231_v54 = vmul.f32 0.03125, %v2230_v53 }
0x1633   : > { %v2232_v55 = vadd.f32 1e-12, %v2231_v54 }
0x1635   : > { %2945 = vrsqrt.f32 %v2232_v55 }
0x1642   : > { %v2946_v56 = vpop.eup %2945 }
0x1643   : > { %v2234_v58 = vmul.f32 %v2946_v56, %v2226_v46 }
0x1645   : > { %v2241_v60 = vmul.f32 %v2588_v57, %v2234_v58 }
0x1647   : > { %v2248_v61 = vadd.f32 %v2589_v59, %v2241_v60 }
0x1649   : > { %2818 = vmatmul.mubr.msk.f32.vlgmr.msra.gmra.mxu1 %vm705_vm0, %v2248_v61  ;;  %2249 = vst.msk [vmem:[%s694_s26] sm:$0xff] %vm705_vm0, %v2248_v61 }
0x164a   : > { %3096 = shalt.err (!%p3093_p1)
}
0x164b   : > { %s3097_s20 = scalar_lea.hbm %s2347_s29, 128  ;;  %s3101_s23 = scalar_lea.hbm %s3966_s25, 256 }
0x164c   : > { %p3098_p3 = scmp.ne.s32.totalorder %s2347_s29, %s3097_s20  ;;  %p3102_p7 = scmp.lt.s32.totalorder %s2347_s29, %s3966_s25 }
0x164d   : > { %p3103_p12 = scmp.lt.s32.totalorder %s3101_s23, %s3097_s20 }
0x164e   : > { %p3099_p6 = pnand %p3098_p3, %p3967_p0 }
0x164f   : > { %p3104_p10 = por %p3103_p12, %p3102_p7 }
0x1650   : > { %p3100_p11 = pneg %p3099_p6 }
0x1652   : > { %p3105_p13 = pnand %p3104_p10, %p3100_p11 }
0x1654   : > { %3108 = shalt.err (!%p3105_p13)
}
0x1655   : > { %2836 = dma.vmem_to_hbm [thread:$0]  (%p3967_p0), %s2350_s16, 128, %s2347_s29, %s2332_s24   ;;  %vm2329_vm5 = vcmask 253952  }
0x1656   : > { %s3968_s3 = sld [smem:[#allocation33_spill]]  ;;  %s2593_s4 = sshll.u32 %s3329_s1, 4 }
0x1657   : > { %s700_s0 = scalar_lea.vmem [#allocation12], %s3479_s19  ;;  %s3969_s23 = sld [smem:[#allocation35_spill]] }
0x1658   : > { %s2362_s20 = sshll.u32 %s700_s0, 4  ;;  %s2337_s29 = scalar_lea.sflag [#allocation13], %s3479_s19  ;;  %s2363_s20 = int_to_ptr.vmem [resolvable:$true] %s2362_s20 }
0x1659   : > { %s3109_s16 = scalar_lea.vmem %s2363_s20, 16  ;;  %s3207_s24 = smov [#allocation12]  }
0x165a   : > { %p3110_p5 = scmp.ne.s32.totalorder %s2363_s20, %s3109_s16  ;;  %s3113_s28 = sshll.u32 %s3207_s24, 4  ;;  %s3114_s28 = int_to_ptr.vmem [resolvable:$false] %s3113_s28 }
0x165b   : > { %s3115_s1 = scalar_lea.vmem %s3114_s28, 32  ;;  %p3116_p4 = scmp.lt.s32.totalorder %s2363_s20, %s3114_s28 }
0x165c   : > { %v2254_v8 = vld [vmem:[%s3968_s3] sm:$0x1]  ;;  %p3111_p9 = pnand %p3110_p5, %p3967_p0  ;;  %p3117_p8 = scmp.lt.s32.totalorder %s3115_s1, %s3109_s16 }
0x165d   : > { %s3854_s27 = scalar_lea.hbm %s3969_s23, %s2593_s4 }
0x165e   : > { %p3112_p2 = pneg %p3111_p9  ;;  %p3118_p1 = por %p3117_p8, %p3116_p4 }
0x1660   : > { %p3119_p3 = pnand %p3118_p1, %p3112_p2 }
0x1709   : > { %v2324_v62 = vpop.f32.mrf.mxu1 }
0x170a   : > { %v2325_v63 = vadd.f32 %v2324_v62, %v2254_v8 }
0x170b   : > { %v2819_v0 = vpop.f32.mrf.mxu1 }
0x170c   : > { %2947 = vtanh.f32 %v2325_v63 }
0x1719   : > { %v2948_v1 = vpop.eup %2947 }
0x171a   : > { %2330 = vst.msk [vmem:[%s700_s0] sm:$0x1] %vm2329_vm5, %v2948_v1 }
0x171b   : > { %3122 = shalt.err (!%p3119_p3)
}
0x171c   : > { %s3123_s2 = scalar_lea.hbm %s3854_s27, 16  ;;  %s3127_s4 = scalar_lea.hbm %s3969_s23, 32 }
0x171d   : > { %p3124_p6 = scmp.ne.s32.totalorder %s3854_s27, %s3123_s2  ;;  %p3128_p12 = scmp.lt.s32.totalorder %s3854_s27, %s3969_s23 }
0x171e   : > { %p3129_p10 = scmp.lt.s32.totalorder %s3127_s4, %s3123_s2 }
0x171f   : > { %p3125_p11 = pnand %p3124_p6, %p3967_p0 }
0x1720   : > { %p3130_p13 = por %p3129_p10, %p3128_p12 }
0x1721   : > { %p3126_p7 = pneg %p3125_p11 }
0x1723   : > { %p3131_p5 = pnand %p3130_p13, %p3126_p7 }
0x1725   : > { %3134 = shalt.err (!%p3131_p5)
}
0x1726   : > { %2837 = dma.vmem_to_hbm [thread:$0]  (%p3967_p0), %s2363_s20, 16, %s3854_s27, %s2337_s29  }
0x1727 PF: > { %s3970_s17 = sld [smem:[#allocation20_spill]]  ;;  %p3973_p2 = scmp.ge.s32.totalorder %s3189_s21, 2 }
0x1728   : > { %s3971_s16 = sld [smem:[#allocation22_spill]] }
0x172d   : > { %s2374_s24 = sand.u32 1, %s3970_s17  }
0x172e   : > { %p3972_p9 = scmp.ne.s32.totalorder %s3971_s16, 0  ;;  %s2375_s28 = scalar_lea.sflag [#allocation4], %s2374_s24 }
0x1730   : > { %p2858_p4 = pnand %p3973_p2, %p3972_p9 }
0x1732   : > { %p2859_p8 = pneg %p2858_p4 }
0x1734   : > { %3168 = dma.done.wait (%p2859_p8), %s2375_s28, 128  }
0x1735   : > { %3170 = vsyncadd (%p2859_p8), %s2375_s28, 4294967168  ;;  %s2384_s1 = scalar_lea.sflag [#allocation13], %s2374_s24 }
0x1736   : > { %3172 = dma.done.wait (%p2859_p8), %s2384_s1, 16  }
0x1737   : > { %3174 = vsyncadd (%p2859_p8), %s2384_s1, 4294967280  ;;  %s3974_s21 = sld [smem:[#allocation23_spill]]  ;;  %s3977_s0 = smov %s3181_s30 }
0x1738   : > { %s3975_s22 = sld [smem:[#allocation21_spill]] }
0x1739   : > { %s3976_s20 = sld [smem:[#allocation24_spill]] }
0x173d   : > { %p40_p0 = scmp.ge.s32.totalorder %s3974_s21, 4  }
0x173e   : > { %s3978_s30 = smov %s3975_s22 }
0x173f   :  { %42 = sbr.rel (!%p40_p0) target bundleno = 21 (0x15), region = 191 }
0x1744   :  { %2388 = vsyncpa [#allocation3], 1 }
0x1745   :  { %2390 = vsyncpa [#allocation3 + $0x1], 1 }
0x1746   :  { %2391 = vsyncpa [#allocation6], 1 }
0x1747   :  { %2393 = vsyncpa [#allocation6 + $0x1], 1 }
0x1748   :  { %2394 = vsyncpa [#allocation9], 1 }
0x1749   :  { %2395 = vsyncpa [#allocation4], 1 }
0x174a   :  { %2397 = vsyncpa [#allocation4 + $0x1], 1 }
0x174b   :  { %2398 = vsyncpa [#allocation13], 1 }
0x174c   :  { %2400 = vsyncpa [#allocation13 + $0x1], 1 }

</bundles_post_ra>
